<compile_context>
chip_gen: v6e
topology: v6e:2x2x1
jax: 0.10.0
libtpu: 0.0.40
codegen_flags: <defaults>
</compile_context>

<pallas_src>
import functools

import jax
import jax.numpy as jnp
import numpy as np
from jax.experimental import pallas as pl
from jax.experimental.pallas import tpu as pltpu

EPS = 1e-5
MATMUL_DTYPE = jnp.bfloat16   # MXU operand dtype (f32 accumulation). jnp.float32 for exact f32.


# ---------------------------------------------------------------------------
# The fused kernel
# ---------------------------------------------------------------------------
def _basic_block_kernel(
    x_ref, rmask_ref, s_ref, st_ref,
    w1a_ref, g1a_ref, e1a_ref, w1b_ref, g1b_ref, e1b_ref,
    w2a_ref, g2a_ref, e2a_ref, w2b_ref, g2b_ref, e2b_ref,
    wds_ref, gds_ref, eds_ref,
    o_ref,
):
    nh, lanes = x_ref.shape            # (N*H, W*Cp) lane-packed activations
    cp = s_ref.shape[1]                # padded channel count
    width = lanes // cp                # spatial W
    inv_cnt = 1.0 / float(nh * width)  # BatchNorm count per channel = N*H*W

    # Row masks, loaded once and reused by all four convs:
    #   column 0 zeroes rows whose y-1 tap leaves the image (or wraps across images),
    #   column 2 zeroes rows whose y+1 tap does.
    m_up = rmask_ref[:, 0:1]
    m_dn = rmask_ref[:, 2:3]

    def _row(m, r):
        # Extract row r of a tiny (2, L) value.  Mosaic value slices want tile-aligned
        # sublane offsets, so use iota-select + a 2-row reduce instead (VPU/XLU-cheap).
        ridx = jax.lax.broadcasted_iota(jnp.int32, m.shape, 0)
        return jnp.sum(jnp.where(ridx == r, m, 0.0), axis=0, keepdims=True)

    def _stack2(a, b):
        # Stack two (1, L) rows into (2, L) without an unaligned sublane concat.
        ridx = jax.lax.broadcasted_iota(jnp.int32, (2,) + a.shape[1:], 0)
        return jnp.where(ridx == 0, a, b)

    def conv3x3(a, w_ref):
        # 3x3 / stride-1 / pad-1 conv as ONE (nh, 3*W*Cp) x (3*W*Cp, W*Cp) matmul.
        # dy taps = sublane rotations (XLU) of `a`, boundary rows masked to zero; the dx
        # shift + channel mixing live in the block-banded packed weights stacked along K.
        # Single f32->bf16 cast per conv, on the fused tap operand.
        up = pltpu.roll(a, 1, axis=0) * m_up          # tap reading row y-1
        dn = pltpu.roll(a, nh - 1, axis=0) * m_dn     # tap reading row y+1 (shift -1 mod nh)
        taps = jnp.concatenate([up, a, dn], axis=-1).astype(MATMUL_DTYPE)
        return jnp.dot(taps, w_ref[...], preferred_element_type=jnp.float32)

    def bn_relu(y, g_ref, e_ref):
        # Training-mode BatchNorm (per-batch biased stats) fused with ReLU.
        # One pooling dot for {sum, sum_sq} and one broadcast dot for {scale, bias}.
        srow = jnp.sum(y, axis=0, keepdims=True)              # (1, W*Cp)
        sqrow = jnp.sum(y * y, axis=0, keepdims=True)
        pooled = jnp.dot(_stack2(srow, sqrow), s_ref[...],
                         preferred_element_type=jnp.float32)  # (2, Cp)
        mean = _row(pooled, 0) * inv_cnt
        var = jnp.maximum(_row(pooled, 1) * inv_cnt - mean * mean, 0.0)  # cancellation guard
        scale = g_ref[...] * jax.lax.rsqrt(var + EPS)          # (1, Cp)
        bias = e_ref[...] - mean * scale
        sb = jnp.dot(_stack2(scale, bias), st_ref[...],
                     preferred_element_type=jnp.float32)       # (2, W*Cp)
        return jnp.maximum(y * _row(sb, 0) + _row(sb, 1), 0.0)

    def block(a, wa_ref, ga_ref, ea_ref, wb_ref, gb_ref, eb_ref):
        hid = bn_relu(conv3x3(a, wa_ref), ga_ref, ea_ref)
        return bn_relu(conv3x3(hid, wb_ref), gb_ref, eb_ref)

    x = x_ref[...]
    out = jnp.maximum(
        x + block(x, w1a_ref, g1a_ref, e1a_ref, w1b_ref, g1b_ref, e1b_ref), 0.0)
    out = out + block(out, w2a_ref, g2a_ref, e2a_ref, w2b_ref, g2b_ref, e2b_ref)

    # downsample: 1x1 conv (block-diagonal packed) -> BN -> ReLU, applied to the block
    # output exactly as in the module's forward.
    # TODO(synk): stride > 1 downsample (row/column subsampling) not implemented;
    #             module default stride=1 is what this reproduces.
    d = jnp.dot(out.astype(MATMUL_DTYPE), wds_ref[...], preferred_element_type=jnp.float32)
    o_ref[...] = bn_relu(d, gds_ref, eds_ref)


# ---------------------------------------------------------------------------
# One-time parameter packing (host-side glue, done at init, not per forward)
# ---------------------------------------------------------------------------
def _pack_conv3x3(wk, width, cp):
    """(3,3,Ci,Co) conv kernel -> (3*W*Cp, W*Cp) block-banded weights stacked along K,
    so a single K=3*W*Cp matmul performs the whole 3x3 conv (dy order matches the
    in-kernel tap concatenation [y-1, y, y+1])."""
    _, _, ci, co = wk.shape
    wk = np.asarray(wk, np.float32)
    out = np.zeros((3, width * cp, width * cp), np.float32)
    for dy in range(3):
        for dx in range(3):
            for xv in range(width):                 # output column xv reads input column xu
                xu = xv + dx - 1
                if 0 <= xu < width:
                    out[dy, xu * cp:xu * cp + ci, xv * cp:xv * cp + co] = wk[dy, dx]
    return jnp.asarray(out.reshape(3 * width * cp, width * cp), MATMUL_DTYPE)


def _pack_conv1x1(wk, width, cp):
    ci, co = wk.shape
    wk = np.asarray(wk, np.float32)
    out = np.zeros((width * cp, width * cp), np.float32)
    for xv in range(width):
        out[xv * cp:xv * cp + ci, xv * cp:xv * cp + co] = wk
    return jnp.asarray(out, MATMUL_DTYPE)


def _pad_vec(v, cp):
    v = np.asarray(v, np.float32)
    return jnp.asarray(np.pad(v, (0, cp - v.shape[0])).reshape(1, cp), jnp.float32)


def pack_params(params, n, h, w, cin, hidden, planes):
    cp = max(cin, hidden, planes)
    # Row mask: column dy zeroes rows whose y + dy - 1 falls outside the image (this also
    # kills the circular-wrap rows introduced by pltpu.roll across image boundaries).
    y = np.arange(n * h) % h
    rmask = np.stack([(y > 0), np.ones_like(y, bool), (y < h - 1)], axis=1).astype(np.float32)
    s = np.tile(np.eye(cp, dtype=np.float32), (w, 1))         # (W*Cp, Cp) channel-pool matrix
    packed = dict(
        rmask=jnp.asarray(rmask),
        s=jnp.asarray(s),
        st=jnp.asarray(np.ascontiguousarray(s.T)),
        wds=_pack_conv1x1(params["ds_w"], w, cp),
        gds=_pad_vec(params["ds_g"], cp),
        eds=_pad_vec(params["ds_b"], cp),
    )
    for i in (1, 2):
        b = params[f"block{i}"]
        packed[f"w{i}a"] = _pack_conv3x3(b["w1"], w, cp)
        packed[f"g{i}a"] = _pad_vec(b["g1"], cp)
        packed[f"e{i}a"] = _pad_vec(b["b1"], cp)
        packed[f"w{i}b"] = _pack_conv3x3(b["w2"], w, cp)
        packed[f"g{i}b"] = _pad_vec(b["g2"], cp)
        packed[f"e{i}b"] = _pad_vec(b["b2"], cp)
    return packed, cp


# ---------------------------------------------------------------------------
# Forward wrapper (layout packing/unpacking is pure glue)
# ---------------------------------------------------------------------------
@functools.partial(jax.jit, static_argnames=("n", "h", "w", "cin", "planes", "cp"))
def basic_block_forward(x_nchw, packed, *, n, h, w, cin, planes, cp):
    # NCHW -> lane-dense (N*H, W*Cp) tokens (channels zero-padded to Cp).
    # TODO(synk): at real sizes accept NHWC / the packed layout directly to avoid this
    #             HBM transpose+pad round trip; negligible at this toy size.
    x = jnp.transpose(x_nchw, (0, 2, 3, 1)).astype(jnp.float32)
    x = jnp.pad(x, ((0, 0), (0, 0), (0, 0), (0, cp - cin)))
    x = x.reshape(n * h, w * cp)

    out = pl.pallas_call(
        _basic_block_kernel,
        out_shape=jax.ShapeDtypeStruct((n * h, w * cp), jnp.float32),
        compiler_params=pltpu.CompilerParams(vmem_limit_bytes=32 * 1024 * 1024),
    )(
        x, packed["rmask"], packed["s"], packed["st"],
        packed["w1a"], packed["g1a"], packed["e1a"],
        packed["w1b"], packed["g1b"], packed["e1b"],
        packed["w2a"], packed["g2a"], packed["e2a"],
        packed["w2b"], packed["g2b"], packed["e2b"],
        packed["wds"], packed["gds"], packed["eds"],
    )

    y = out.reshape(n, h, w, cp)[..., :planes]
    return jnp.transpose(y, (0, 3, 1, 2))            # back to NCHW


# ---------------------------------------------------------------------------
# Deterministic parameter init (shapes from BasicBlock.__init__)
# NOTE: conv weight layout here is (kh, kw, Cin, Cout); real PyTorch weights
#       (Cout, Cin, kh, kw) would need w_pt.transpose(2, 3, 1, 0).
# TODO(synk): BatchNorm running_mean/running_var buffers are neither consumed nor updated
#             (pure training-mode forward, matching the per-batch-stats semantics).
# ---------------------------------------------------------------------------
def init_params(key, in_planes, hidden, planes):
    k1, k2, k3 = jax.random.split(key, 3)

    def block_params(k):
        ka, kb = jax.random.split(k)
        return dict(
            w1=0.1 * jax.random.normal(ka, (3, 3, in_planes, hidden), jnp.float32),
            g1=jnp.ones((hidden,), jnp.float32), b1=jnp.zeros((hidden,), jnp.float32),
            w2=0.1 * jax.random.normal(kb, (3, 3, hidden, in_planes), jnp.float32),
            g2=jnp.ones((in_planes,), jnp.float32), b2=jnp.zeros((in_planes,), jnp.float32),
        )

    return dict(
        block1=block_params(k1),
        block2=block_params(k2),
        ds_w=0.1 * jax.random.normal(k3, (in_planes, planes), jnp.float32),
        ds_g=jnp.ones((planes,), jnp.float32),
        ds_b=jnp.zeros((planes,), jnp.float32),
    )


# ---------------------------------------------------------------------------
# Pure-JAX reference (same mixed-precision matmul policy) for self-validation
# ---------------------------------------------------------------------------
def _reference_forward(x_nchw, params):
    def mm(a):
        return a.astype(MATMUL_DTYPE)

    def conv3x3(a, wk):
        n, h, w, _ = a.shape
        ap = jnp.pad(a, ((0, 0), (1, 1), (1, 1), (0, 0)))
        out = 0.0
        for dy in range(3):
            for dx in range(3):
                tap = ap[:, dy:dy + h, dx:dx + w, :]
                out = out + jnp.einsum("nhwi,io->nhwo", mm(tap), mm(wk[dy, dx]),
                                       preferred_element_type=jnp.float32)
        return out

    def bn_relu(y, g, b):
        mean = jnp.mean(y, axis=(0, 1, 2))
        var = jnp.var(y, axis=(0, 1, 2))            # biased variance = training-mode BN
        return jax.nn.relu((y - mean) * (g * jax.lax.rsqrt(var + EPS)) + b)

    def block(a, p):
        hid = bn_relu(conv3x3(a, p["w1"]), p["g1"], p["b1"])
        return bn_relu(conv3x3(hid, p["w2"]), p["g2"], p["b2"])

    x = jnp.transpose(x_nchw, (0, 2, 3, 1)).astype(jnp.float32)
    out = jax.nn.relu(x + block(x, params["block1"]))
    out = out + block(out, params["block2"])
    d = jnp.einsum("nhwi,io->nhwo", mm(out), mm(params["ds_w"]),
                   preferred_element_type=jnp.float32)
    out = bn_relu(d, params["ds_g"], params["ds_b"])
    return jnp.transpose(out, (0, 3, 1, 2))


if __name__ == "__main__":
    key = jax.random.PRNGKey(0)
    kx, kp = jax.random.split(key)

    # BasicBlock(in_planes=4, hidden=8, planes=8, stride=1) on x: (2, 4, 16, 16) NCHW
    N, C, H, W = 2, 4, 16, 16
    hidden, planes = 8, 8

    x = jax.random.normal(kx, (N, C, H, W), jnp.float32)
    params = init_params(kp, C, hidden, planes)
    packed, cp = pack_params(params, N, H, W, C, hidden, planes)

    y = basic_block_forward(x, packed, n=N, h=H, w=W, cin=C, planes=planes, cp=cp)
    jax.block_until_ready(y)
    assert y.shape == (N, planes, H, W) and y.dtype == jnp.float32

    # Self-check against a pure-JAX reference with matched bf16 matmul rounding.
    y_ref = _reference_forward(x, params)
    max_err = float(jnp.max(jnp.abs(y - y_ref)))
    assert max_err < 5e-2, f"mismatch vs reference: max |err| = {max_err}"

    print("KERNEL_OK")
</pallas_src>

<mosaic_0001>
module attributes {stable_mosaic.version = 11 : i64} {
  func.func @_basic_block_kernel(%arg0: memref<32x128xf32, #tpu.memory_space<vmem>>, %arg1: memref<32x3xf32, #tpu.memory_space<vmem>>, %arg2: memref<128x8xf32, #tpu.memory_space<vmem>>, %arg3: memref<8x128xf32, #tpu.memory_space<vmem>>, %arg4: memref<384x128xbf16, #tpu.memory_space<vmem>>, %arg5: memref<1x8xf32, #tpu.memory_space<vmem>>, %arg6: memref<1x8xf32, #tpu.memory_space<vmem>>, %arg7: memref<384x128xbf16, #tpu.memory_space<vmem>>, %arg8: memref<1x8xf32, #tpu.memory_space<vmem>>, %arg9: memref<1x8xf32, #tpu.memory_space<vmem>>, %arg10: memref<384x128xbf16, #tpu.memory_space<vmem>>, %arg11: memref<1x8xf32, #tpu.memory_space<vmem>>, %arg12: memref<1x8xf32, #tpu.memory_space<vmem>>, %arg13: memref<384x128xbf16, #tpu.memory_space<vmem>>, %arg14: memref<1x8xf32, #tpu.memory_space<vmem>>, %arg15: memref<1x8xf32, #tpu.memory_space<vmem>>, %arg16: memref<128x128xbf16, #tpu.memory_space<vmem>>, %arg17: memref<1x8xf32, #tpu.memory_space<vmem>>, %arg18: memref<1x8xf32, #tpu.memory_space<vmem>>, %arg19: memref<32x128xf32, #tpu.memory_space<vmem>>) attributes {dimension_semantics = [], scalar_prefetch = 0 : i64, scratch_operands = 0 : i64, tpu.core_type = #tpu.core_type<tc>} {
    %c0 = arith.constant 0 : index
    %c0_0 = arith.constant 0 : index
    %0 = vector.load %arg1[%c0, %c0_0] : memref<32x3xf32, #tpu.memory_space<vmem>>, vector<32x1xf32>
    %c0_1 = arith.constant 0 : index
    %c2 = arith.constant 2 : index
    %1 = vector.load %arg1[%c0_1, %c2] : memref<32x3xf32, #tpu.memory_space<vmem>>, vector<32x1xf32>
    %c0_2 = arith.constant 0 : index
    %c0_3 = arith.constant 0 : index
    %2 = vector.load %arg0[%c0_2, %c0_3] : memref<32x128xf32, #tpu.memory_space<vmem>>, vector<32x128xf32>
    %c1_i32 = arith.constant 1 : i32
    %3 = tpu.dynamic_rotate %2 by %c1_i32 dim 0 : vector<32x128xf32>, i32 -> vector<32x128xf32>
    %4 = vector.broadcast %0 : vector<32x1xf32> to vector<32x128xf32>
    %5 = arith.mulf %3, %4 : vector<32x128xf32>
    %c31_i32 = arith.constant 31 : i32
    %6 = tpu.dynamic_rotate %2 by %c31_i32 dim 0 : vector<32x128xf32>, i32 -> vector<32x128xf32>
    %7 = vector.broadcast %1 : vector<32x1xf32> to vector<32x128xf32>
    %8 = arith.mulf %6, %7 : vector<32x128xf32>
    %9 = tpu.concatenate %5, %2, %8 in 1 : vector<32x128xf32>, vector<32x128xf32>, vector<32x128xf32> -> vector<32x384xf32>
    %10 = arith.truncf %9 : vector<32x384xf32> to vector<32x384xbf16>
    %c0_4 = arith.constant 0 : index
    %c0_5 = arith.constant 0 : index
    %11 = vector.load %arg4[%c0_4, %c0_5] : memref<384x128xbf16, #tpu.memory_space<vmem>>, vector<384x128xbf16>
    %cst = arith.constant dense<0.000000e+00> : vector<32x128xf32>
    %12 = tpu.matmul %10, %11, %cst {dimension_numbers = #tpu.dot_dimension_numbers<[1], [0], [0], [1], [0, 0, 1, 1], [], []>} : vector<32x384xbf16>, vector<384x128xbf16>, vector<32x128xf32> -> vector<32x128xf32>
    %cst_6 = arith.constant dense<0.000000e+00> : vector<128xf32>
    %13 = vector.multi_reduction <add>, %12, %cst_6 [0] : vector<32x128xf32> to vector<128xf32>
    %14 = vector.shape_cast %13 : vector<128xf32> to vector<1x128xf32>
    %15 = arith.mulf %12, %12 : vector<32x128xf32>
    %cst_7 = arith.constant dense<0.000000e+00> : vector<128xf32>
    %16 = vector.multi_reduction <add>, %15, %cst_7 [0] : vector<32x128xf32> to vector<128xf32>
    %17 = vector.shape_cast %16 : vector<128xf32> to vector<1x128xf32>
    %18 = tpu.iota {dimensions = array<i32: 0>} : vector<2x128xi32>
    %c0_i32 = arith.constant 0 : i32
    %19 = vector.broadcast %c0_i32 : i32 to vector<2x128xi32>
    %20 = arith.cmpi eq, %18, %19 : vector<2x128xi32>
    %21 = vector.shape_cast %14 : vector<1x128xf32> to vector<1x128xf32>
    %22 = vector.broadcast %21 : vector<1x128xf32> to vector<2x128xf32>
    %23 = vector.shape_cast %17 : vector<1x128xf32> to vector<1x128xf32>
    %24 = vector.broadcast %23 : vector<1x128xf32> to vector<2x128xf32>
    %25 = arith.select %20, %22, %24 : vector<2x128xi1>, vector<2x128xf32>
    %c0_8 = arith.constant 0 : index
    %c0_9 = arith.constant 0 : index
    %26 = vector.load %arg2[%c0_8, %c0_9] : memref<128x8xf32, #tpu.memory_space<vmem>>, vector<128x8xf32>
    %cst_10 = arith.constant dense<0.000000e+00> : vector<2x8xf32>
    %27 = tpu.matmul %25, %26, %cst_10 {dimension_numbers = #tpu.dot_dimension_numbers<[1], [0], [0], [1], [0, 0, 1, 1], [], []>} : vector<2x128xf32>, vector<128x8xf32>, vector<2x8xf32> -> vector<2x8xf32>
    %28 = tpu.iota {dimensions = array<i32: 0>} : vector<2x8xi32>
    %c0_i32_11 = arith.constant 0 : i32
    %29 = vector.broadcast %c0_i32_11 : i32 to vector<2x8xi32>
    %30 = arith.cmpi eq, %28, %29 : vector<2x8xi32>
    %cst_12 = arith.constant 0.000000e+00 : f32
    %31 = vector.broadcast %cst_12 : f32 to vector<2x8xf32>
    %32 = arith.select %30, %27, %31 : vector<2x8xi1>, vector<2x8xf32>
    %cst_13 = arith.constant dense<0.000000e+00> : vector<8xf32>
    %33 = vector.multi_reduction <add>, %32, %cst_13 [0] : vector<2x8xf32> to vector<8xf32>
    %34 = vector.shape_cast %33 : vector<8xf32> to vector<1x8xf32>
    %cst_14 = arith.constant 0.001953125 : f32
    %35 = vector.broadcast %cst_14 : f32 to vector<1x8xf32>
    %36 = arith.mulf %34, %35 : vector<1x8xf32>
    %37 = tpu.iota {dimensions = array<i32: 0>} : vector<2x8xi32>
    %c1_i32_15 = arith.constant 1 : i32
    %38 = vector.broadcast %c1_i32_15 : i32 to vector<2x8xi32>
    %39 = arith.cmpi eq, %37, %38 : vector<2x8xi32>
    %cst_16 = arith.constant 0.000000e+00 : f32
    %40 = vector.broadcast %cst_16 : f32 to vector<2x8xf32>
    %41 = arith.select %39, %27, %40 : vector<2x8xi1>, vector<2x8xf32>
    %cst_17 = arith.constant dense<0.000000e+00> : vector<8xf32>
    %42 = vector.multi_reduction <add>, %41, %cst_17 [0] : vector<2x8xf32> to vector<8xf32>
    %43 = vector.shape_cast %42 : vector<8xf32> to vector<1x8xf32>
    %cst_18 = arith.constant 0.001953125 : f32
    %44 = vector.broadcast %cst_18 : f32 to vector<1x8xf32>
    %45 = arith.mulf %43, %44 : vector<1x8xf32>
    %46 = arith.mulf %36, %36 : vector<1x8xf32>
    %47 = arith.subf %45, %46 : vector<1x8xf32>
    %cst_19 = arith.constant 0.000000e+00 : f32
    %48 = vector.broadcast %cst_19 : f32 to vector<1x8xf32>
    %49 = arith.maximumf %47, %48 : vector<1x8xf32>
    %c0_20 = arith.constant 0 : index
    %c0_21 = arith.constant 0 : index
    %50 = vector.load %arg5[%c0_20, %c0_21] : memref<1x8xf32, #tpu.memory_space<vmem>>, vector<1x8xf32>
    %cst_22 = arith.constant 9.99999974E-6 : f32
    %51 = vector.broadcast %cst_22 : f32 to vector<1x8xf32>
    %52 = arith.addf %49, %51 : vector<1x8xf32>
    %53 = math.rsqrt %52 : vector<1x8xf32>
    %54 = arith.mulf %50, %53 : vector<1x8xf32>
    %c0_23 = arith.constant 0 : index
    %c0_24 = arith.constant 0 : index
    %55 = vector.load %arg6[%c0_23, %c0_24] : memref<1x8xf32, #tpu.memory_space<vmem>>, vector<1x8xf32>
    %56 = arith.mulf %36, %54 : vector<1x8xf32>
    %57 = arith.subf %55, %56 : vector<1x8xf32>
    %58 = tpu.iota {dimensions = array<i32: 0>} : vector<2x8xi32>
    %c0_i32_25 = arith.constant 0 : i32
    %59 = vector.broadcast %c0_i32_25 : i32 to vector<2x8xi32>
    %60 = arith.cmpi eq, %58, %59 : vector<2x8xi32>
    %61 = vector.shape_cast %54 : vector<1x8xf32> to vector<1x8xf32>
    %62 = vector.broadcast %61 : vector<1x8xf32> to vector<2x8xf32>
    %63 = vector.shape_cast %57 : vector<1x8xf32> to vector<1x8xf32>
    %64 = vector.broadcast %63 : vector<1x8xf32> to vector<2x8xf32>
    %65 = arith.select %60, %62, %64 : vector<2x8xi1>, vector<2x8xf32>
    %c0_26 = arith.constant 0 : index
    %c0_27 = arith.constant 0 : index
    %66 = vector.load %arg3[%c0_26, %c0_27] : memref<8x128xf32, #tpu.memory_space<vmem>>, vector<8x128xf32>
    %cst_28 = arith.constant dense<0.000000e+00> : vector<2x128xf32>
    %67 = tpu.matmul %65, %66, %cst_28 {dimension_numbers = #tpu.dot_dimension_numbers<[1], [0], [0], [1], [0, 0, 1, 1], [], []>} : vector<2x8xf32>, vector<8x128xf32>, vector<2x128xf32> -> vector<2x128xf32>
    %68 = tpu.iota {dimensions = array<i32: 0>} : vector<2x128xi32>
    %c0_i32_29 = arith.constant 0 : i32
    %69 = vector.broadcast %c0_i32_29 : i32 to vector<2x128xi32>
    %70 = arith.cmpi eq, %68, %69 : vector<2x128xi32>
    %cst_30 = arith.constant 0.000000e+00 : f32
    %71 = vector.broadcast %cst_30 : f32 to vector<2x128xf32>
    %72 = arith.select %70, %67, %71 : vector<2x128xi1>, vector<2x128xf32>
    %cst_31 = arith.constant dense<0.000000e+00> : vector<128xf32>
    %73 = vector.multi_reduction <add>, %72, %cst_31 [0] : vector<2x128xf32> to vector<128xf32>
    %74 = vector.shape_cast %73 : vector<128xf32> to vector<1x128xf32>
    %75 = vector.broadcast %74 : vector<1x128xf32> to vector<32x128xf32>
    %76 = arith.mulf %12, %75 : vector<32x128xf32>
    %77 = tpu.iota {dimensions = array<i32: 0>} : vector<2x128xi32>
    %c1_i32_32 = arith.constant 1 : i32
    %78 = vector.broadcast %c1_i32_32 : i32 to vector<2x128xi32>
    %79 = arith.cmpi eq, %77, %78 : vector<2x128xi32>
    %cst_33 = arith.constant 0.000000e+00 : f32
    %80 = vector.broadcast %cst_33 : f32 to vector<2x128xf32>
    %81 = arith.select %79, %67, %80 : vector<2x128xi1>, vector<2x128xf32>
    %cst_34 = arith.constant dense<0.000000e+00> : vector<128xf32>
    %82 = vector.multi_reduction <add>, %81, %cst_34 [0] : vector<2x128xf32> to vector<128xf32>
    %83 = vector.shape_cast %82 : vector<128xf32> to vector<1x128xf32>
    %84 = vector.broadcast %83 : vector<1x128xf32> to vector<32x128xf32>
    %85 = arith.addf %76, %84 : vector<32x128xf32>
    %cst_35 = arith.constant 0.000000e+00 : f32
    %86 = vector.broadcast %cst_35 : f32 to vector<32x128xf32>
    %87 = arith.maximumf %85, %86 : vector<32x128xf32>
    %c1_i32_36 = arith.constant 1 : i32
    %88 = tpu.dynamic_rotate %87 by %c1_i32_36 dim 0 : vector<32x128xf32>, i32 -> vector<32x128xf32>
    %89 = vector.broadcast %0 : vector<32x1xf32> to vector<32x128xf32>
    %90 = arith.mulf %88, %89 : vector<32x128xf32>
    %c31_i32_37 = arith.constant 31 : i32
    %91 = tpu.dynamic_rotate %87 by %c31_i32_37 dim 0 : vector<32x128xf32>, i32 -> vector<32x128xf32>
    %92 = vector.broadcast %1 : vector<32x1xf32> to vector<32x128xf32>
    %93 = arith.mulf %91, %92 : vector<32x128xf32>
    %94 = tpu.concatenate %90, %87, %93 in 1 : vector<32x128xf32>, vector<32x128xf32>, vector<32x128xf32> -> vector<32x384xf32>
    %95 = arith.truncf %94 : vector<32x384xf32> to vector<32x384xbf16>
    %c0_38 = arith.constant 0 : index
    %c0_39 = arith.constant 0 : index
    %96 = vector.load %arg7[%c0_38, %c0_39] : memref<384x128xbf16, #tpu.memory_space<vmem>>, vector<384x128xbf16>
    %cst_40 = arith.constant dense<0.000000e+00> : vector<32x128xf32>
    %97 = tpu.matmul %95, %96, %cst_40 {dimension_numbers = #tpu.dot_dimension_numbers<[1], [0], [0], [1], [0, 0, 1, 1], [], []>} : vector<32x384xbf16>, vector<384x128xbf16>, vector<32x128xf32> -> vector<32x128xf32>
    %cst_41 = arith.constant dense<0.000000e+00> : vector<128xf32>
    %98 = vector.multi_reduction <add>, %97, %cst_41 [0] : vector<32x128xf32> to vector<128xf32>
    %99 = vector.shape_cast %98 : vector<128xf32> to vector<1x128xf32>
    %100 = arith.mulf %97, %97 : vector<32x128xf32>
    %cst_42 = arith.constant dense<0.000000e+00> : vector<128xf32>
    %101 = vector.multi_reduction <add>, %100, %cst_42 [0] : vector<32x128xf32> to vector<128xf32>
    %102 = vector.shape_cast %101 : vector<128xf32> to vector<1x128xf32>
    %103 = tpu.iota {dimensions = array<i32: 0>} : vector<2x128xi32>
    %c0_i32_43 = arith.constant 0 : i32
    %104 = vector.broadcast %c0_i32_43 : i32 to vector<2x128xi32>
    %105 = arith.cmpi eq, %103, %104 : vector<2x128xi32>
    %106 = vector.shape_cast %99 : vector<1x128xf32> to vector<1x128xf32>
    %107 = vector.broadcast %106 : vector<1x128xf32> to vector<2x128xf32>
    %108 = vector.shape_cast %102 : vector<1x128xf32> to vector<1x128xf32>
    %109 = vector.broadcast %108 : vector<1x128xf32> to vector<2x128xf32>
    %110 = arith.select %105, %107, %109 : vector<2x128xi1>, vector<2x128xf32>
    %c0_44 = arith.constant 0 : index
    %c0_45 = arith.constant 0 : index
    %111 = vector.load %arg2[%c0_44, %c0_45] : memref<128x8xf32, #tpu.memory_space<vmem>>, vector<128x8xf32>
    %cst_46 = arith.constant dense<0.000000e+00> : vector<2x8xf32>
    %112 = tpu.matmul %110, %111, %cst_46 {dimension_numbers = #tpu.dot_dimension_numbers<[1], [0], [0], [1], [0, 0, 1, 1], [], []>} : vector<2x128xf32>, vector<128x8xf32>, vector<2x8xf32> -> vector<2x8xf32>
    %113 = tpu.iota {dimensions = array<i32: 0>} : vector<2x8xi32>
    %c0_i32_47 = arith.constant 0 : i32
    %114 = vector.broadcast %c0_i32_47 : i32 to vector<2x8xi32>
    %115 = arith.cmpi eq, %113, %114 : vector<2x8xi32>
    %cst_48 = arith.constant 0.000000e+00 : f32
    %116 = vector.broadcast %cst_48 : f32 to vector<2x8xf32>
    %117 = arith.select %115, %112, %116 : vector<2x8xi1>, vector<2x8xf32>
    %cst_49 = arith.constant dense<0.000000e+00> : vector<8xf32>
    %118 = vector.multi_reduction <add>, %117, %cst_49 [0] : vector<2x8xf32> to vector<8xf32>
    %119 = vector.shape_cast %118 : vector<8xf32> to vector<1x8xf32>
    %cst_50 = arith.constant 0.001953125 : f32
    %120 = vector.broadcast %cst_50 : f32 to vector<1x8xf32>
    %121 = arith.mulf %119, %120 : vector<1x8xf32>
    %122 = tpu.iota {dimensions = array<i32: 0>} : vector<2x8xi32>
    %c1_i32_51 = arith.constant 1 : i32
    %123 = vector.broadcast %c1_i32_51 : i32 to vector<2x8xi32>
    %124 = arith.cmpi eq, %122, %123 : vector<2x8xi32>
    %cst_52 = arith.constant 0.000000e+00 : f32
    %125 = vector.broadcast %cst_52 : f32 to vector<2x8xf32>
    %126 = arith.select %124, %112, %125 : vector<2x8xi1>, vector<2x8xf32>
    %cst_53 = arith.constant dense<0.000000e+00> : vector<8xf32>
    %127 = vector.multi_reduction <add>, %126, %cst_53 [0] : vector<2x8xf32> to vector<8xf32>
    %128 = vector.shape_cast %127 : vector<8xf32> to vector<1x8xf32>
    %cst_54 = arith.constant 0.001953125 : f32
    %129 = vector.broadcast %cst_54 : f32 to vector<1x8xf32>
    %130 = arith.mulf %128, %129 : vector<1x8xf32>
    %131 = arith.mulf %121, %121 : vector<1x8xf32>
    %132 = arith.subf %130, %131 : vector<1x8xf32>
    %cst_55 = arith.constant 0.000000e+00 : f32
    %133 = vector.broadcast %cst_55 : f32 to vector<1x8xf32>
    %134 = arith.maximumf %132, %133 : vector<1x8xf32>
    %c0_56 = arith.constant 0 : index
    %c0_57 = arith.constant 0 : index
    %135 = vector.load %arg8[%c0_56, %c0_57] : memref<1x8xf32, #tpu.memory_space<vmem>>, vector<1x8xf32>
    %cst_58 = arith.constant 9.99999974E-6 : f32
    %136 = vector.broadcast %cst_58 : f32 to vector<1x8xf32>
    %137 = arith.addf %134, %136 : vector<1x8xf32>
    %138 = math.rsqrt %137 : vector<1x8xf32>
    %139 = arith.mulf %135, %138 : vector<1x8xf32>
    %c0_59 = arith.constant 0 : index
    %c0_60 = arith.constant 0 : index
    %140 = vector.load %arg9[%c0_59, %c0_60] : memref<1x8xf32, #tpu.memory_space<vmem>>, vector<1x8xf32>
    %141 = arith.mulf %121, %139 : vector<1x8xf32>
    %142 = arith.subf %140, %141 : vector<1x8xf32>
    %143 = tpu.iota {dimensions = array<i32: 0>} : vector<2x8xi32>
    %c0_i32_61 = arith.constant 0 : i32
    %144 = vector.broadcast %c0_i32_61 : i32 to vector<2x8xi32>
    %145 = arith.cmpi eq, %143, %144 : vector<2x8xi32>
    %146 = vector.shape_cast %139 : vector<1x8xf32> to vector<1x8xf32>
    %147 = vector.broadcast %146 : vector<1x8xf32> to vector<2x8xf32>
    %148 = vector.shape_cast %142 : vector<1x8xf32> to vector<1x8xf32>
    %149 = vector.broadcast %148 : vector<1x8xf32> to vector<2x8xf32>
    %150 = arith.select %145, %147, %149 : vector<2x8xi1>, vector<2x8xf32>
    %c0_62 = arith.constant 0 : index
    %c0_63 = arith.constant 0 : index
    %151 = vector.load %arg3[%c0_62, %c0_63] : memref<8x128xf32, #tpu.memory_space<vmem>>, vector<8x128xf32>
    %cst_64 = arith.constant dense<0.000000e+00> : vector<2x128xf32>
    %152 = tpu.matmul %150, %151, %cst_64 {dimension_numbers = #tpu.dot_dimension_numbers<[1], [0], [0], [1], [0, 0, 1, 1], [], []>} : vector<2x8xf32>, vector<8x128xf32>, vector<2x128xf32> -> vector<2x128xf32>
    %153 = tpu.iota {dimensions = array<i32: 0>} : vector<2x128xi32>
    %c0_i32_65 = arith.constant 0 : i32
    %154 = vector.broadcast %c0_i32_65 : i32 to vector<2x128xi32>
    %155 = arith.cmpi eq, %153, %154 : vector<2x128xi32>
    %cst_66 = arith.constant 0.000000e+00 : f32
    %156 = vector.broadcast %cst_66 : f32 to vector<2x128xf32>
    %157 = arith.select %155, %152, %156 : vector<2x128xi1>, vector<2x128xf32>
    %cst_67 = arith.constant dense<0.000000e+00> : vector<128xf32>
    %158 = vector.multi_reduction <add>, %157, %cst_67 [0] : vector<2x128xf32> to vector<128xf32>
    %159 = vector.shape_cast %158 : vector<128xf32> to vector<1x128xf32>
    %160 = vector.broadcast %159 : vector<1x128xf32> to vector<32x128xf32>
    %161 = arith.mulf %97, %160 : vector<32x128xf32>
    %162 = tpu.iota {dimensions = array<i32: 0>} : vector<2x128xi32>
    %c1_i32_68 = arith.constant 1 : i32
    %163 = vector.broadcast %c1_i32_68 : i32 to vector<2x128xi32>
    %164 = arith.cmpi eq, %162, %163 : vector<2x128xi32>
    %cst_69 = arith.constant 0.000000e+00 : f32
    %165 = vector.broadcast %cst_69 : f32 to vector<2x128xf32>
    %166 = arith.select %164, %152, %165 : vector<2x128xi1>, vector<2x128xf32>
    %cst_70 = arith.constant dense<0.000000e+00> : vector<128xf32>
    %167 = vector.multi_reduction <add>, %166, %cst_70 [0] : vector<2x128xf32> to vector<128xf32>
    %168 = vector.shape_cast %167 : vector<128xf32> to vector<1x128xf32>
    %169 = vector.broadcast %168 : vector<1x128xf32> to vector<32x128xf32>
    %170 = arith.addf %161, %169 : vector<32x128xf32>
    %cst_71 = arith.constant 0.000000e+00 : f32
    %171 = vector.broadcast %cst_71 : f32 to vector<32x128xf32>
    %172 = arith.maximumf %170, %171 : vector<32x128xf32>
    %173 = arith.addf %2, %172 : vector<32x128xf32>
    %cst_72 = arith.constant 0.000000e+00 : f32
    %174 = vector.broadcast %cst_72 : f32 to vector<32x128xf32>
    %175 = arith.maximumf %173, %174 : vector<32x128xf32>
    %c1_i32_73 = arith.constant 1 : i32
    %176 = tpu.dynamic_rotate %175 by %c1_i32_73 dim 0 : vector<32x128xf32>, i32 -> vector<32x128xf32>
    %177 = vector.broadcast %0 : vector<32x1xf32> to vector<32x128xf32>
    %178 = arith.mulf %176, %177 : vector<32x128xf32>
    %c31_i32_74 = arith.constant 31 : i32
    %179 = tpu.dynamic_rotate %175 by %c31_i32_74 dim 0 : vector<32x128xf32>, i32 -> vector<32x128xf32>
    %180 = vector.broadcast %1 : vector<32x1xf32> to vector<32x128xf32>
    %181 = arith.mulf %179, %180 : vector<32x128xf32>
    %182 = tpu.concatenate %178, %175, %181 in 1 : vector<32x128xf32>, vector<32x128xf32>, vector<32x128xf32> -> vector<32x384xf32>
    %183 = arith.truncf %182 : vector<32x384xf32> to vector<32x384xbf16>
    %c0_75 = arith.constant 0 : index
    %c0_76 = arith.constant 0 : index
    %184 = vector.load %arg10[%c0_75, %c0_76] : memref<384x128xbf16, #tpu.memory_space<vmem>>, vector<384x128xbf16>
    %cst_77 = arith.constant dense<0.000000e+00> : vector<32x128xf32>
    %185 = tpu.matmul %183, %184, %cst_77 {dimension_numbers = #tpu.dot_dimension_numbers<[1], [0], [0], [1], [0, 0, 1, 1], [], []>} : vector<32x384xbf16>, vector<384x128xbf16>, vector<32x128xf32> -> vector<32x128xf32>
    %cst_78 = arith.constant dense<0.000000e+00> : vector<128xf32>
    %186 = vector.multi_reduction <add>, %185, %cst_78 [0] : vector<32x128xf32> to vector<128xf32>
    %187 = vector.shape_cast %186 : vector<128xf32> to vector<1x128xf32>
    %188 = arith.mulf %185, %185 : vector<32x128xf32>
    %cst_79 = arith.constant dense<0.000000e+00> : vector<128xf32>
    %189 = vector.multi_reduction <add>, %188, %cst_79 [0] : vector<32x128xf32> to vector<128xf32>
    %190 = vector.shape_cast %189 : vector<128xf32> to vector<1x128xf32>
    %191 = tpu.iota {dimensions = array<i32: 0>} : vector<2x128xi32>
    %c0_i32_80 = arith.constant 0 : i32
    %192 = vector.broadcast %c0_i32_80 : i32 to vector<2x128xi32>
    %193 = arith.cmpi eq, %191, %192 : vector<2x128xi32>
    %194 = vector.shape_cast %187 : vector<1x128xf32> to vector<1x128xf32>
    %195 = vector.broadcast %194 : vector<1x128xf32> to vector<2x128xf32>
    %196 = vector.shape_cast %190 : vector<1x128xf32> to vector<1x128xf32>
    %197 = vector.broadcast %196 : vector<1x128xf32> to vector<2x128xf32>
    %198 = arith.select %193, %195, %197 : vector<2x128xi1>, vector<2x128xf32>
    %c0_81 = arith.constant 0 : index
    %c0_82 = arith.constant 0 : index
    %199 = vector.load %arg2[%c0_81, %c0_82] : memref<128x8xf32, #tpu.memory_space<vmem>>, vector<128x8xf32>
    %cst_83 = arith.constant dense<0.000000e+00> : vector<2x8xf32>
    %200 = tpu.matmul %198, %199, %cst_83 {dimension_numbers = #tpu.dot_dimension_numbers<[1], [0], [0], [1], [0, 0, 1, 1], [], []>} : vector<2x128xf32>, vector<128x8xf32>, vector<2x8xf32> -> vector<2x8xf32>
    %201 = tpu.iota {dimensions = array<i32: 0>} : vector<2x8xi32>
    %c0_i32_84 = arith.constant 0 : i32
    %202 = vector.broadcast %c0_i32_84 : i32 to vector<2x8xi32>
    %203 = arith.cmpi eq, %201, %202 : vector<2x8xi32>
    %cst_85 = arith.constant 0.000000e+00 : f32
    %204 = vector.broadcast %cst_85 : f32 to vector<2x8xf32>
    %205 = arith.select %203, %200, %204 : vector<2x8xi1>, vector<2x8xf32>
    %cst_86 = arith.constant dense<0.000000e+00> : vector<8xf32>
    %206 = vector.multi_reduction <add>, %205, %cst_86 [0] : vector<2x8xf32> to vector<8xf32>
    %207 = vector.shape_cast %206 : vector<8xf32> to vector<1x8xf32>
    %cst_87 = arith.constant 0.001953125 : f32
    %208 = vector.broadcast %cst_87 : f32 to vector<1x8xf32>
    %209 = arith.mulf %207, %208 : vector<1x8xf32>
    %210 = tpu.iota {dimensions = array<i32: 0>} : vector<2x8xi32>
    %c1_i32_88 = arith.constant 1 : i32
    %211 = vector.broadcast %c1_i32_88 : i32 to vector<2x8xi32>
    %212 = arith.cmpi eq, %210, %211 : vector<2x8xi32>
    %cst_89 = arith.constant 0.000000e+00 : f32
    %213 = vector.broadcast %cst_89 : f32 to vector<2x8xf32>
    %214 = arith.select %212, %200, %213 : vector<2x8xi1>, vector<2x8xf32>
    %cst_90 = arith.constant dense<0.000000e+00> : vector<8xf32>
    %215 = vector.multi_reduction <add>, %214, %cst_90 [0] : vector<2x8xf32> to vector<8xf32>
    %216 = vector.shape_cast %215 : vector<8xf32> to vector<1x8xf32>
    %cst_91 = arith.constant 0.001953125 : f32
    %217 = vector.broadcast %cst_91 : f32 to vector<1x8xf32>
    %218 = arith.mulf %216, %217 : vector<1x8xf32>
    %219 = arith.mulf %209, %209 : vector<1x8xf32>
    %220 = arith.subf %218, %219 : vector<1x8xf32>
    %cst_92 = arith.constant 0.000000e+00 : f32
    %221 = vector.broadcast %cst_92 : f32 to vector<1x8xf32>
    %222 = arith.maximumf %220, %221 : vector<1x8xf32>
    %c0_93 = arith.constant 0 : index
    %c0_94 = arith.constant 0 : index
    %223 = vector.load %arg11[%c0_93, %c0_94] : memref<1x8xf32, #tpu.memory_space<vmem>>, vector<1x8xf32>
    %cst_95 = arith.constant 9.99999974E-6 : f32
    %224 = vector.broadcast %cst_95 : f32 to vector<1x8xf32>
    %225 = arith.addf %222, %224 : vector<1x8xf32>
    %226 = math.rsqrt %225 : vector<1x8xf32>
    %227 = arith.mulf %223, %226 : vector<1x8xf32>
    %c0_96 = arith.constant 0 : index
    %c0_97 = arith.constant 0 : index
    %228 = vector.load %arg12[%c0_96, %c0_97] : memref<1x8xf32, #tpu.memory_space<vmem>>, vector<1x8xf32>
    %229 = arith.mulf %209, %227 : vector<1x8xf32>
    %230 = arith.subf %228, %229 : vector<1x8xf32>
    %231 = tpu.iota {dimensions = array<i32: 0>} : vector<2x8xi32>
    %c0_i32_98 = arith.constant 0 : i32
    %232 = vector.broadcast %c0_i32_98 : i32 to vector<2x8xi32>
    %233 = arith.cmpi eq, %231, %232 : vector<2x8xi32>
    %234 = vector.shape_cast %227 : vector<1x8xf32> to vector<1x8xf32>
    %235 = vector.broadcast %234 : vector<1x8xf32> to vector<2x8xf32>
    %236 = vector.shape_cast %230 : vector<1x8xf32> to vector<1x8xf32>
    %237 = vector.broadcast %236 : vector<1x8xf32> to vector<2x8xf32>
    %238 = arith.select %233, %235, %237 : vector<2x8xi1>, vector<2x8xf32>
    %c0_99 = arith.constant 0 : index
    %c0_100 = arith.constant 0 : index
    %239 = vector.load %arg3[%c0_99, %c0_100] : memref<8x128xf32, #tpu.memory_space<vmem>>, vector<8x128xf32>
    %cst_101 = arith.constant dense<0.000000e+00> : vector<2x128xf32>
    %240 = tpu.matmul %238, %239, %cst_101 {dimension_numbers = #tpu.dot_dimension_numbers<[1], [0], [0], [1], [0, 0, 1, 1], [], []>} : vector<2x8xf32>, vector<8x128xf32>, vector<2x128xf32> -> vector<2x128xf32>
    %241 = tpu.iota {dimensions = array<i32: 0>} : vector<2x128xi32>
    %c0_i32_102 = arith.constant 0 : i32
    %242 = vector.broadcast %c0_i32_102 : i32 to vector<2x128xi32>
    %243 = arith.cmpi eq, %241, %242 : vector<2x128xi32>
    %cst_103 = arith.constant 0.000000e+00 : f32
    %244 = vector.broadcast %cst_103 : f32 to vector<2x128xf32>
    %245 = arith.select %243, %240, %244 : vector<2x128xi1>, vector<2x128xf32>
    %cst_104 = arith.constant dense<0.000000e+00> : vector<128xf32>
    %246 = vector.multi_reduction <add>, %245, %cst_104 [0] : vector<2x128xf32> to vector<128xf32>
    %247 = vector.shape_cast %246 : vector<128xf32> to vector<1x128xf32>
    %248 = vector.broadcast %247 : vector<1x128xf32> to vector<32x128xf32>
    %249 = arith.mulf %185, %248 : vector<32x128xf32>
    %250 = tpu.iota {dimensions = array<i32: 0>} : vector<2x128xi32>
    %c1_i32_105 = arith.constant 1 : i32
    %251 = vector.broadcast %c1_i32_105 : i32 to vector<2x128xi32>
    %252 = arith.cmpi eq, %250, %251 : vector<2x128xi32>
    %cst_106 = arith.constant 0.000000e+00 : f32
    %253 = vector.broadcast %cst_106 : f32 to vector<2x128xf32>
    %254 = arith.select %252, %240, %253 : vector<2x128xi1>, vector<2x128xf32>
    %cst_107 = arith.constant dense<0.000000e+00> : vector<128xf32>
    %255 = vector.multi_reduction <add>, %254, %cst_107 [0] : vector<2x128xf32> to vector<128xf32>
    %256 = vector.shape_cast %255 : vector<128xf32> to vector<1x128xf32>
    %257 = vector.broadcast %256 : vector<1x128xf32> to vector<32x128xf32>
    %258 = arith.addf %249, %257 : vector<32x128xf32>
    %cst_108 = arith.constant 0.000000e+00 : f32
    %259 = vector.broadcast %cst_108 : f32 to vector<32x128xf32>
    %260 = arith.maximumf %258, %259 : vector<32x128xf32>
    %c1_i32_109 = arith.constant 1 : i32
    %261 = tpu.dynamic_rotate %260 by %c1_i32_109 dim 0 : vector<32x128xf32>, i32 -> vector<32x128xf32>
    %262 = vector.broadcast %0 : vector<32x1xf32> to vector<32x128xf32>
    %263 = arith.mulf %261, %262 : vector<32x128xf32>
    %c31_i32_110 = arith.constant 31 : i32
    %264 = tpu.dynamic_rotate %260 by %c31_i32_110 dim 0 : vector<32x128xf32>, i32 -> vector<32x128xf32>
    %265 = vector.broadcast %1 : vector<32x1xf32> to vector<32x128xf32>
    %266 = arith.mulf %264, %265 : vector<32x128xf32>
    %267 = tpu.concatenate %263, %260, %266 in 1 : vector<32x128xf32>, vector<32x128xf32>, vector<32x128xf32> -> vector<32x384xf32>
    %268 = arith.truncf %267 : vector<32x384xf32> to vector<32x384xbf16>
    %c0_111 = arith.constant 0 : index
    %c0_112 = arith.constant 0 : index
    %269 = vector.load %arg13[%c0_111, %c0_112] : memref<384x128xbf16, #tpu.memory_space<vmem>>, vector<384x128xbf16>
    %cst_113 = arith.constant dense<0.000000e+00> : vector<32x128xf32>
    %270 = tpu.matmul %268, %269, %cst_113 {dimension_numbers = #tpu.dot_dimension_numbers<[1], [0], [0], [1], [0, 0, 1, 1], [], []>} : vector<32x384xbf16>, vector<384x128xbf16>, vector<32x128xf32> -> vector<32x128xf32>
    %cst_114 = arith.constant dense<0.000000e+00> : vector<128xf32>
    %271 = vector.multi_reduction <add>, %270, %cst_114 [0] : vector<32x128xf32> to vector<128xf32>
    %272 = vector.shape_cast %271 : vector<128xf32> to vector<1x128xf32>
    %273 = arith.mulf %270, %270 : vector<32x128xf32>
    %cst_115 = arith.constant dense<0.000000e+00> : vector<128xf32>
    %274 = vector.multi_reduction <add>, %273, %cst_115 [0] : vector<32x128xf32> to vector<128xf32>
    %275 = vector.shape_cast %274 : vector<128xf32> to vector<1x128xf32>
    %276 = tpu.iota {dimensions = array<i32: 0>} : vector<2x128xi32>
    %c0_i32_116 = arith.constant 0 : i32
    %277 = vector.broadcast %c0_i32_116 : i32 to vector<2x128xi32>
    %278 = arith.cmpi eq, %276, %277 : vector<2x128xi32>
    %279 = vector.shape_cast %272 : vector<1x128xf32> to vector<1x128xf32>
    %280 = vector.broadcast %279 : vector<1x128xf32> to vector<2x128xf32>
    %281 = vector.shape_cast %275 : vector<1x128xf32> to vector<1x128xf32>
    %282 = vector.broadcast %281 : vector<1x128xf32> to vector<2x128xf32>
    %283 = arith.select %278, %280, %282 : vector<2x128xi1>, vector<2x128xf32>
    %c0_117 = arith.constant 0 : index
    %c0_118 = arith.constant 0 : index
    %284 = vector.load %arg2[%c0_117, %c0_118] : memref<128x8xf32, #tpu.memory_space<vmem>>, vector<128x8xf32>
    %cst_119 = arith.constant dense<0.000000e+00> : vector<2x8xf32>
    %285 = tpu.matmul %283, %284, %cst_119 {dimension_numbers = #tpu.dot_dimension_numbers<[1], [0], [0], [1], [0, 0, 1, 1], [], []>} : vector<2x128xf32>, vector<128x8xf32>, vector<2x8xf32> -> vector<2x8xf32>
    %286 = tpu.iota {dimensions = array<i32: 0>} : vector<2x8xi32>
    %c0_i32_120 = arith.constant 0 : i32
    %287 = vector.broadcast %c0_i32_120 : i32 to vector<2x8xi32>
    %288 = arith.cmpi eq, %286, %287 : vector<2x8xi32>
    %cst_121 = arith.constant 0.000000e+00 : f32
    %289 = vector.broadcast %cst_121 : f32 to vector<2x8xf32>
    %290 = arith.select %288, %285, %289 : vector<2x8xi1>, vector<2x8xf32>
    %cst_122 = arith.constant dense<0.000000e+00> : vector<8xf32>
    %291 = vector.multi_reduction <add>, %290, %cst_122 [0] : vector<2x8xf32> to vector<8xf32>
    %292 = vector.shape_cast %291 : vector<8xf32> to vector<1x8xf32>
    %cst_123 = arith.constant 0.001953125 : f32
    %293 = vector.broadcast %cst_123 : f32 to vector<1x8xf32>
    %294 = arith.mulf %292, %293 : vector<1x8xf32>
    %295 = tpu.iota {dimensions = array<i32: 0>} : vector<2x8xi32>
    %c1_i32_124 = arith.constant 1 : i32
    %296 = vector.broadcast %c1_i32_124 : i32 to vector<2x8xi32>
    %297 = arith.cmpi eq, %295, %296 : vector<2x8xi32>
    %cst_125 = arith.constant 0.000000e+00 : f32
    %298 = vector.broadcast %cst_125 : f32 to vector<2x8xf32>
    %299 = arith.select %297, %285, %298 : vector<2x8xi1>, vector<2x8xf32>
    %cst_126 = arith.constant dense<0.000000e+00> : vector<8xf32>
    %300 = vector.multi_reduction <add>, %299, %cst_126 [0] : vector<2x8xf32> to vector<8xf32>
    %301 = vector.shape_cast %300 : vector<8xf32> to vector<1x8xf32>
    %cst_127 = arith.constant 0.001953125 : f32
    %302 = vector.broadcast %cst_127 : f32 to vector<1x8xf32>
    %303 = arith.mulf %301, %302 : vector<1x8xf32>
    %304 = arith.mulf %294, %294 : vector<1x8xf32>
    %305 = arith.subf %303, %304 : vector<1x8xf32>
    %cst_128 = arith.constant 0.000000e+00 : f32
    %306 = vector.broadcast %cst_128 : f32 to vector<1x8xf32>
    %307 = arith.maximumf %305, %306 : vector<1x8xf32>
    %c0_129 = arith.constant 0 : index
    %c0_130 = arith.constant 0 : index
    %308 = vector.load %arg14[%c0_129, %c0_130] : memref<1x8xf32, #tpu.memory_space<vmem>>, vector<1x8xf32>
    %cst_131 = arith.constant 9.99999974E-6 : f32
    %309 = vector.broadcast %cst_131 : f32 to vector<1x8xf32>
    %310 = arith.addf %307, %309 : vector<1x8xf32>
    %311 = math.rsqrt %310 : vector<1x8xf32>
    %312 = arith.mulf %308, %311 : vector<1x8xf32>
    %c0_132 = arith.constant 0 : index
    %c0_133 = arith.constant 0 : index
    %313 = vector.load %arg15[%c0_132, %c0_133] : memref<1x8xf32, #tpu.memory_space<vmem>>, vector<1x8xf32>
    %314 = arith.mulf %294, %312 : vector<1x8xf32>
    %315 = arith.subf %313, %314 : vector<1x8xf32>
    %316 = tpu.iota {dimensions = array<i32: 0>} : vector<2x8xi32>
    %c0_i32_134 = arith.constant 0 : i32
    %317 = vector.broadcast %c0_i32_134 : i32 to vector<2x8xi32>
    %318 = arith.cmpi eq, %316, %317 : vector<2x8xi32>
    %319 = vector.shape_cast %312 : vector<1x8xf32> to vector<1x8xf32>
    %320 = vector.broadcast %319 : vector<1x8xf32> to vector<2x8xf32>
    %321 = vector.shape_cast %315 : vector<1x8xf32> to vector<1x8xf32>
    %322 = vector.broadcast %321 : vector<1x8xf32> to vector<2x8xf32>
    %323 = arith.select %318, %320, %322 : vector<2x8xi1>, vector<2x8xf32>
    %c0_135 = arith.constant 0 : index
    %c0_136 = arith.constant 0 : index
    %324 = vector.load %arg3[%c0_135, %c0_136] : memref<8x128xf32, #tpu.memory_space<vmem>>, vector<8x128xf32>
    %cst_137 = arith.constant dense<0.000000e+00> : vector<2x128xf32>
    %325 = tpu.matmul %323, %324, %cst_137 {dimension_numbers = #tpu.dot_dimension_numbers<[1], [0], [0], [1], [0, 0, 1, 1], [], []>} : vector<2x8xf32>, vector<8x128xf32>, vector<2x128xf32> -> vector<2x128xf32>
    %326 = tpu.iota {dimensions = array<i32: 0>} : vector<2x128xi32>
    %c0_i32_138 = arith.constant 0 : i32
    %327 = vector.broadcast %c0_i32_138 : i32 to vector<2x128xi32>
    %328 = arith.cmpi eq, %326, %327 : vector<2x128xi32>
    %cst_139 = arith.constant 0.000000e+00 : f32
    %329 = vector.broadcast %cst_139 : f32 to vector<2x128xf32>
    %330 = arith.select %328, %325, %329 : vector<2x128xi1>, vector<2x128xf32>
    %cst_140 = arith.constant dense<0.000000e+00> : vector<128xf32>
    %331 = vector.multi_reduction <add>, %330, %cst_140 [0] : vector<2x128xf32> to vector<128xf32>
    %332 = vector.shape_cast %331 : vector<128xf32> to vector<1x128xf32>
    %333 = vector.broadcast %332 : vector<1x128xf32> to vector<32x128xf32>
    %334 = arith.mulf %270, %333 : vector<32x128xf32>
    %335 = tpu.iota {dimensions = array<i32: 0>} : vector<2x128xi32>
    %c1_i32_141 = arith.constant 1 : i32
    %336 = vector.broadcast %c1_i32_141 : i32 to vector<2x128xi32>
    %337 = arith.cmpi eq, %335, %336 : vector<2x128xi32>
    %cst_142 = arith.constant 0.000000e+00 : f32
    %338 = vector.broadcast %cst_142 : f32 to vector<2x128xf32>
    %339 = arith.select %337, %325, %338 : vector<2x128xi1>, vector<2x128xf32>
    %cst_143 = arith.constant dense<0.000000e+00> : vector<128xf32>
    %340 = vector.multi_reduction <add>, %339, %cst_143 [0] : vector<2x128xf32> to vector<128xf32>
    %341 = vector.shape_cast %340 : vector<128xf32> to vector<1x128xf32>
    %342 = vector.broadcast %341 : vector<1x128xf32> to vector<32x128xf32>
    %343 = arith.addf %334, %342 : vector<32x128xf32>
    %cst_144 = arith.constant 0.000000e+00 : f32
    %344 = vector.broadcast %cst_144 : f32 to vector<32x128xf32>
    %345 = arith.maximumf %343, %344 : vector<32x128xf32>
    %346 = arith.addf %175, %345 : vector<32x128xf32>
    %347 = arith.truncf %346 : vector<32x128xf32> to vector<32x128xbf16>
    %c0_145 = arith.constant 0 : index
    %c0_146 = arith.constant 0 : index
    %348 = vector.load %arg16[%c0_145, %c0_146] : memref<128x128xbf16, #tpu.memory_space<vmem>>, vector<128x128xbf16>
    %cst_147 = arith.constant dense<0.000000e+00> : vector<32x128xf32>
    %349 = tpu.matmul %347, %348, %cst_147 {dimension_numbers = #tpu.dot_dimension_numbers<[1], [0], [0], [1], [0, 0, 1, 1], [], []>} : vector<32x128xbf16>, vector<128x128xbf16>, vector<32x128xf32> -> vector<32x128xf32>
    %cst_148 = arith.constant dense<0.000000e+00> : vector<128xf32>
    %350 = vector.multi_reduction <add>, %349, %cst_148 [0] : vector<32x128xf32> to vector<128xf32>
    %351 = vector.shape_cast %350 : vector<128xf32> to vector<1x128xf32>
    %352 = arith.mulf %349, %349 : vector<32x128xf32>
    %cst_149 = arith.constant dense<0.000000e+00> : vector<128xf32>
    %353 = vector.multi_reduction <add>, %352, %cst_149 [0] : vector<32x128xf32> to vector<128xf32>
    %354 = vector.shape_cast %353 : vector<128xf32> to vector<1x128xf32>
    %355 = tpu.iota {dimensions = array<i32: 0>} : vector<2x128xi32>
    %c0_i32_150 = arith.constant 0 : i32
    %356 = vector.broadcast %c0_i32_150 : i32 to vector<2x128xi32>
    %357 = arith.cmpi eq, %355, %356 : vector<2x128xi32>
    %358 = vector.shape_cast %351 : vector<1x128xf32> to vector<1x128xf32>
    %359 = vector.broadcast %358 : vector<1x128xf32> to vector<2x128xf32>
    %360 = vector.shape_cast %354 : vector<1x128xf32> to vector<1x128xf32>
    %361 = vector.broadcast %360 : vector<1x128xf32> to vector<2x128xf32>
    %362 = arith.select %357, %359, %361 : vector<2x128xi1>, vector<2x128xf32>
    %c0_151 = arith.constant 0 : index
    %c0_152 = arith.constant 0 : index
    %363 = vector.load %arg2[%c0_151, %c0_152] : memref<128x8xf32, #tpu.memory_space<vmem>>, vector<128x8xf32>
    %cst_153 = arith.constant dense<0.000000e+00> : vector<2x8xf32>
    %364 = tpu.matmul %362, %363, %cst_153 {dimension_numbers = #tpu.dot_dimension_numbers<[1], [0], [0], [1], [0, 0, 1, 1], [], []>} : vector<2x128xf32>, vector<128x8xf32>, vector<2x8xf32> -> vector<2x8xf32>
    %365 = tpu.iota {dimensions = array<i32: 0>} : vector<2x8xi32>
    %c0_i32_154 = arith.constant 0 : i32
    %366 = vector.broadcast %c0_i32_154 : i32 to vector<2x8xi32>
    %367 = arith.cmpi eq, %365, %366 : vector<2x8xi32>
    %cst_155 = arith.constant 0.000000e+00 : f32
    %368 = vector.broadcast %cst_155 : f32 to vector<2x8xf32>
    %369 = arith.select %367, %364, %368 : vector<2x8xi1>, vector<2x8xf32>
    %cst_156 = arith.constant dense<0.000000e+00> : vector<8xf32>
    %370 = vector.multi_reduction <add>, %369, %cst_156 [0] : vector<2x8xf32> to vector<8xf32>
    %371 = vector.shape_cast %370 : vector<8xf32> to vector<1x8xf32>
    %cst_157 = arith.constant 0.001953125 : f32
    %372 = vector.broadcast %cst_157 : f32 to vector<1x8xf32>
    %373 = arith.mulf %371, %372 : vector<1x8xf32>
    %374 = tpu.iota {dimensions = array<i32: 0>} : vector<2x8xi32>
    %c1_i32_158 = arith.constant 1 : i32
    %375 = vector.broadcast %c1_i32_158 : i32 to vector<2x8xi32>
    %376 = arith.cmpi eq, %374, %375 : vector<2x8xi32>
    %cst_159 = arith.constant 0.000000e+00 : f32
    %377 = vector.broadcast %cst_159 : f32 to vector<2x8xf32>
    %378 = arith.select %376, %364, %377 : vector<2x8xi1>, vector<2x8xf32>
    %cst_160 = arith.constant dense<0.000000e+00> : vector<8xf32>
    %379 = vector.multi_reduction <add>, %378, %cst_160 [0] : vector<2x8xf32> to vector<8xf32>
    %380 = vector.shape_cast %379 : vector<8xf32> to vector<1x8xf32>
    %cst_161 = arith.constant 0.001953125 : f32
    %381 = vector.broadcast %cst_161 : f32 to vector<1x8xf32>
    %382 = arith.mulf %380, %381 : vector<1x8xf32>
    %383 = arith.mulf %373, %373 : vector<1x8xf32>
    %384 = arith.subf %382, %383 : vector<1x8xf32>
    %cst_162 = arith.constant 0.000000e+00 : f32
    %385 = vector.broadcast %cst_162 : f32 to vector<1x8xf32>
    %386 = arith.maximumf %384, %385 : vector<1x8xf32>
    %c0_163 = arith.constant 0 : index
    %c0_164 = arith.constant 0 : index
    %387 = vector.load %arg17[%c0_163, %c0_164] : memref<1x8xf32, #tpu.memory_space<vmem>>, vector<1x8xf32>
    %cst_165 = arith.constant 9.99999974E-6 : f32
    %388 = vector.broadcast %cst_165 : f32 to vector<1x8xf32>
    %389 = arith.addf %386, %388 : vector<1x8xf32>
    %390 = math.rsqrt %389 : vector<1x8xf32>
    %391 = arith.mulf %387, %390 : vector<1x8xf32>
    %c0_166 = arith.constant 0 : index
    %c0_167 = arith.constant 0 : index
    %392 = vector.load %arg18[%c0_166, %c0_167] : memref<1x8xf32, #tpu.memory_space<vmem>>, vector<1x8xf32>
    %393 = arith.mulf %373, %391 : vector<1x8xf32>
    %394 = arith.subf %392, %393 : vector<1x8xf32>
    %395 = tpu.iota {dimensions = array<i32: 0>} : vector<2x8xi32>
    %c0_i32_168 = arith.constant 0 : i32
    %396 = vector.broadcast %c0_i32_168 : i32 to vector<2x8xi32>
    %397 = arith.cmpi eq, %395, %396 : vector<2x8xi32>
    %398 = vector.shape_cast %391 : vector<1x8xf32> to vector<1x8xf32>
    %399 = vector.broadcast %398 : vector<1x8xf32> to vector<2x8xf32>
    %400 = vector.shape_cast %394 : vector<1x8xf32> to vector<1x8xf32>
    %401 = vector.broadcast %400 : vector<1x8xf32> to vector<2x8xf32>
    %402 = arith.select %397, %399, %401 : vector<2x8xi1>, vector<2x8xf32>
    %c0_169 = arith.constant 0 : index
    %c0_170 = arith.constant 0 : index
    %403 = vector.load %arg3[%c0_169, %c0_170] : memref<8x128xf32, #tpu.memory_space<vmem>>, vector<8x128xf32>
    %cst_171 = arith.constant dense<0.000000e+00> : vector<2x128xf32>
    %404 = tpu.matmul %402, %403, %cst_171 {dimension_numbers = #tpu.dot_dimension_numbers<[1], [0], [0], [1], [0, 0, 1, 1], [], []>} : vector<2x8xf32>, vector<8x128xf32>, vector<2x128xf32> -> vector<2x128xf32>
    %405 = tpu.iota {dimensions = array<i32: 0>} : vector<2x128xi32>
    %c0_i32_172 = arith.constant 0 : i32
    %406 = vector.broadcast %c0_i32_172 : i32 to vector<2x128xi32>
    %407 = arith.cmpi eq, %405, %406 : vector<2x128xi32>
    %cst_173 = arith.constant 0.000000e+00 : f32
    %408 = vector.broadcast %cst_173 : f32 to vector<2x128xf32>
    %409 = arith.select %407, %404, %408 : vector<2x128xi1>, vector<2x128xf32>
    %cst_174 = arith.constant dense<0.000000e+00> : vector<128xf32>
    %410 = vector.multi_reduction <add>, %409, %cst_174 [0] : vector<2x128xf32> to vector<128xf32>
    %411 = vector.shape_cast %410 : vector<128xf32> to vector<1x128xf32>
    %412 = vector.broadcast %411 : vector<1x128xf32> to vector<32x128xf32>
    %413 = arith.mulf %349, %412 : vector<32x128xf32>
    %414 = tpu.iota {dimensions = array<i32: 0>} : vector<2x128xi32>
    %c1_i32_175 = arith.constant 1 : i32
    %415 = vector.broadcast %c1_i32_175 : i32 to vector<2x128xi32>
    %416 = arith.cmpi eq, %414, %415 : vector<2x128xi32>
    %cst_176 = arith.constant 0.000000e+00 : f32
    %417 = vector.broadcast %cst_176 : f32 to vector<2x128xf32>
    %418 = arith.select %416, %404, %417 : vector<2x128xi1>, vector<2x128xf32>
    %cst_177 = arith.constant dense<0.000000e+00> : vector<128xf32>
    %419 = vector.multi_reduction <add>, %418, %cst_177 [0] : vector<2x128xf32> to vector<128xf32>
    %420 = vector.shape_cast %419 : vector<128xf32> to vector<1x128xf32>
    %421 = vector.broadcast %420 : vector<1x128xf32> to vector<32x128xf32>
    %422 = arith.addf %413, %421 : vector<32x128xf32>
    %cst_178 = arith.constant 0.000000e+00 : f32
    %423 = vector.broadcast %cst_178 : f32 to vector<32x128xf32>
    %424 = arith.maximumf %422, %423 : vector<32x128xf32>
    %c0_179 = arith.constant 0 : index
    %c0_180 = arith.constant 0 : index
    %425 = vector.load %arg19[%c0_179, %c0_180] : memref<32x128xf32, #tpu.memory_space<vmem>>, vector<32x128xf32>
    tpu.vector_store %arg19[%c0_179, %c0_180], %424 {strides = array<i32>} : memref<32x128xf32, #tpu.memory_space<vmem>>, vector<32x128xf32>,
    return
  }
}

</mosaic_0001>

<bundles_post_ra>
// kernel: basic_block_forward.1
= control target key start
LH: loop header
LB: loop body
LE: loop exit
PB: predicated region body
PF: predicated region fallthrough
CT: control target
= control target key end

     0   :  { %v3535_v0 = vmov 2   ;;  %v3536_v1 = vmov 0   ;;  %v75_v33 = vlaneseq  ;;  %vm3538_vm2 = vmmov 0   ;;  %s4751_s1 = inlined_call_operand.vmem [shape: f32[32,3], index: 1, kind: input, shape index: {}]   ;;  %s4752_s4 = inlined_call_operand.vmem [shape: bf16[384,128], index: 4, kind: input, shape index: {}]   ;;  %s4753_s0 = inlined_call_operand.vmem [shape: f32[32,128], index: 0, kind: input, shape index: {}]   ;;  %s4754_s2 = inlined_call_operand.vmem [shape: f32[128,8], index: 2, kind: input, shape index: {}]   ;;  %s4755_s3 = inlined_call_operand.vmem [shape: f32[8,128], index: 3, kind: input, shape index: {}]   ;;  %s4756_s7 = inlined_call_operand.vmem [shape: bf16[384,128], index: 7, kind: input, shape index: {}]   ;;  %s4757_s5 = inlined_call_operand.vmem [shape: f32[1,8], index: 5, kind: input, shape index: {}]   ;;  %s4758_s6 = inlined_call_operand.vmem [shape: f32[1,8], index: 6, kind: input, shape index: {}]   ;;  %s4759_s8 = inlined_call_operand.vmem [shape: f32[1,8], index: 8, kind: input, shape index: {}]   ;;  %s4760_s9 = inlined_call_operand.vmem [shape: f32[1,8], index: 9, kind: input, shape index: {}]   ;;  %s4761_s10 = inlined_call_operand.vmem [shape: bf16[384,128], index: 10, kind: input, shape index: {}]   ;;  %s4762_s13 = inlined_call_operand.vmem [shape: bf16[384,128], index: 13, kind: input, shape index: {}]   ;;  %s4763_s11 = inlined_call_operand.vmem [shape: f32[1,8], index: 11, kind: input, shape index: {}]   ;;  %s4764_s12 = inlined_call_operand.vmem [shape: f32[1,8], index: 12, kind: input, shape index: {}]   ;;  %s4765_s16 = inlined_call_operand.vmem [shape: bf16[128,128], index: 16, kind: input, shape index: {}]   ;;  %s4766_s14 = inlined_call_operand.vmem [shape: f32[1,8], index: 14, kind: input, shape index: {}]   ;;  %s4767_s15 = inlined_call_operand.vmem [shape: f32[1,8], index: 15, kind: input, shape index: {}]   ;;  %s4768_s17 = inlined_call_operand.vmem [shape: f32[1,8], index: 17, kind: input, shape index: {}]   ;;  %s4769_s18 = inlined_call_operand.vmem [shape: f32[1,8], index: 18, kind: input, shape index: {}]   ;;  %s4770_s19 = inlined_call_operand.vmem [shape: f32[32,128], index: 19, kind: output, shape index: {}]  }
   0x1   :  { %4775 = sst [smem:[#allocation2_spill]] %s4751_s1  ;;  %3394 = vset.pattern.permute.xlu1 %v3535_v0  ;;  %3393 = vset.pattern.permute.xlu0 %v3536_v1  ;;  %vm542_vm5 = vcmask 58368   ;;  %vm585_vm6 = vcmask 64512   ;;  %vm660_vm7 = vcmask 1041408  }
   0x2   :  { %4776 = sst [smem:[#allocation3_spill]] %s4752_s4  ;;  %v3735_v36 = vshrl.u32 %v75_v33, 7 }
   0x3   :  { %4777 = sst [smem:[#allocation4_spill]] %s4753_s0 }
   0x4   :  { %4778 = sst [smem:[#allocation5_spill]] %s4754_s2  ;;  %vm110_vm0 = vcmp.lt.s32.totalorder %v3735_v36, 7  ;;  %vm77_vm1 = vcmp.lt.s32.totalorder %v3735_v36, 1  ;;  %vm453_vm3 = vcmp.eq.s32.totalorder %v3735_v36, 0  ;;  %vm551_vm4 = vcmp.eq.s32.totalorder %v3735_v36, 1 }
   0x5   :  { %s4779_s20 = sld [smem:[#allocation2_spill]] }
   0x6   :  { %s4780_s23 = sld [smem:[#allocation3_spill]] }
   0x7   :  { %s4781_s0 = sld [smem:[#allocation4_spill]] }
   0x8   :  { %s4782_s28 = sld [smem:[#allocation5_spill]] }
   0xb   :  { %v63_v2 = vld [vmem:[%s4779_s20] sm:$0xff]  ;;  %v64_v3 = vld [vmem:[%s4779_s20 + $0x8] sm:$0xff]  ;;  %v66_v6 = vld [vmem:[%s4779_s20 + $0x18] sm:$0xff] }
   0xc   :  { %116 = vperm.xlu1 %3394, %v63_v2   ;;  %84 = vperm.xlu0 %3393, %v63_v2   ;;  %v3399_v4 = vld [vmem:[%s4780_s23 + $0x78] sm:$0xff]   ;;  %v3401_v7 = vld [vmem:[%s4780_s23 + $0x70] sm:$0xff]   ;;  %v3404_v11 = vld [vmem:[%s4780_s23 + $0x68] sm:$0xff]  }
   0xd   :  { %v3400_v5 = vld [vmem:[%s4780_s23 + $0x38] sm:$0xff]   ;;  %2832 = vmatprep.subr.bf16.mxu0 %v3399_v4  ;;  %v65_v8 = vld [vmem:[%s4779_s20 + $0x10] sm:$0xff]  ;;  %v3405_v13 = vld [vmem:[%s4780_s23 + $0x28] sm:$0xff]  }
   0xe   :  { %v3402_v9 = vld [vmem:[%s4780_s23 + $0x30] sm:$0xff]   ;;  %2833 = vmatpush3.bf16.msra.mxu0 %v3400_v5  ;;  %v3403_v10 = vld [vmem:[%s4780_s23 + $0xb8] sm:$0xff]   ;;  %v3407_v14 = vld [vmem:[%s4780_s23 + $0x60] sm:$0xff]  }
   0xf   :  { %2834 = vmatprep.subr.bf16.mxu0 %v3401_v7  ;;  %3089 = vmatprep.subr.bf16.mxu1 %v3403_v10  ;;  %v3406_v12 = vld [vmem:[%s4780_s23 + $0xb0] sm:$0xff]   ;;  %v3409_v15 = vld [vmem:[%s4780_s23 + $0xa8] sm:$0xff]   ;;  %v3408_v16 = vld [vmem:[%s4780_s23 + $0x20] sm:$0xff]  }
  0x10   :  { %120 = vperm.xlu1 %3394, %v64_v3   ;;  %89 = vperm.xlu0 %3393, %v64_v3   ;;  %v3410_v17 = vld [vmem:[%s4780_s23 + $0x58] sm:$0xff]   ;;  %v3412_v18 = vld [vmem:[%s4780_s23 + $0xa0] sm:$0xff]   ;;  %v3413_v20 = vld [vmem:[%s4780_s23 + $0x50] sm:$0xff]  }
  0x11   :  { %3090 = vmatpush3.bf16.msra.mxu1 %v3403_v10  ;;  %v3411_v19 = vld [vmem:[%s4780_s23 + $0x18] sm:$0xff]   ;;  %v3414_v22 = vld [vmem:[%s4780_s23 + $0x10] sm:$0xff]   ;;  %v3416_v23 = vld [vmem:[%s4780_s23 + $0x48] sm:$0xff]   ;;  %v3537_v10 = vmov 0.0  }
  0x12   :  { %2835 = vmatpush3.bf16.msra.mxu0 %v3402_v9  ;;  %3091 = vmatprep.subr.bf16.mxu1 %v3406_v12  ;;  %v3415_v21 = vld [vmem:[%s4780_s23 + $0x98] sm:$0xff]   ;;  %v67_v24 = vld [vmem:[%s4781_s0] sm:$0xff]  ;;  %v68_v25 = vld [vmem:[%s4781_s0 + $0x8] sm:$0xff] }
  0x13   :  { %2836 = vmatprep.subr.bf16.mxu0 %v3404_v11  ;;  %v3418_v26 = vld [vmem:[%s4780_s23 + $0x90] sm:$0xff]   ;;  %v136_v27 = vpack.c.bf16 %v68_v25, %v67_v24  ;;  %v3417_v28 = vld [vmem:[%s4780_s23 + $0x8] sm:$0xff]   ;;  %v3419_v29 = vld [vmem:[%s4780_s23 + $0x40] sm:$0xff]   ;;  %v71_v37 = vrot.slane %v67_v24, 7  ;;  %v72_v38 = vrot.slane %v68_v25, 7  ;;  %v106_v41 = vrot.slane %v67_v24, 1 }
  0x14   :  { %128 = vperm.xlu1 %3394, %v66_v6   ;;  %3395 = vset.pattern.permute.xlu0 %v3535_v0  ;;  %v3421_v30 = vld [vmem:[%s4780_s23 + $0x88] sm:$0xff]   ;;  %v3420_v31 = vld [vmem:[%s4780_s23] sm:$0xff]   ;;  %v69_v34 = vld [vmem:[%s4781_s0 + $0x10] sm:$0xff]  ;;  %v107_v42 = vrot.slane %v68_v25, 1 }
  0x15   :  { %124 = vperm.xlu0 %3395, %v65_v8   ;;  %3092 = vmatpush3.bf16.msra.mxu1 %v3406_v12  ;;  %v3422_v32 = vld [vmem:[%s4780_s23 + $0x80] sm:$0xff]   ;;  %v70_v35 = vld [vmem:[%s4781_s0 + $0x18] sm:$0xff]  ;;  %v108_v39 = vrot.slane %v69_v34, 1  ;;  %v80_v46 = vsel %vm77_vm1, %v71_v37, %v72_v38  ;;  %v73_v61 = vrot.slane %v69_v34, 7  ;;  %v3791_v12 = vld [vmem:[%s4782_s28 + $0x70] sm:$0xff] }
  0x16   :  { %2837 = vmatpush3.bf16.msra.mxu0 %v3405_v13  ;;  %3093 = vmatprep.subr.bf16.mxu1 %v3409_v15  ;;  %v74_v40 = vrot.slane %v70_v35, 7  ;;  %v109_v45 = vrot.slane %v70_v35, 1  ;;  %v113_v49 = vsel %vm110_vm0, %v106_v41, %v107_v42  ;;  %v139_v57 = vpack.c.bf16 %v70_v35, %v69_v34  ;;  %v3783_v11 = vld [vmem:[%s4782_s28 + $0x78] sm:$0xff]  ;;  %v3798_v13 = vld [vmem:[%s4782_s28 + $0x68] sm:$0xff]  ;;  %v3873_v24 = vld [vmem:[%s4782_s28 + $0x10] sm:$0xff] }
  0x17   :  { %2838 = vmatprep.subr.bf16.mxu0 %v3407_v14  ;;  %365 = vmatprep.mubr.bf16.mxu0 %v136_v27  ;;  %v112_v48 = vsel %vm110_vm0, %v107_v42, %v108_v39  ;;  %v79_v2 = vsel %vm77_vm1, %v72_v38, %v73_v61  ;;  %v3805_v14 = vld [vmem:[%s4782_s28 + $0x60] sm:$0xff]  ;;  %v3884_v25 = vld [vmem:[%s4782_s28 + $0x8] sm:$0xff] }
  0x18   :  { %3396 = vset.pattern.permute.xlu1 %v3536_v1  ;;  %v81_v47 = vsel %vm77_vm1, %v74_v40, %v71_v37  ;;  %v114_v56 = vsel %vm110_vm0, %v109_v45, %v106_v41  ;;  %v111_v58 = vsel %vm110_vm0, %v108_v39, %v109_v45  ;;  %v78_v3 = vsel %vm77_vm1, %v73_v61, %v74_v40 }
  0x19   :  { %3397 = vset.pattern.permute.xlu0 %v3536_v1  ;;  %94 = vperm.xlu1 %3396, %v65_v8  }
  0x1a   :  { %99 = vperm.xlu0 %3397, %v66_v6   ;;  %2839 = vmatpush3.bf16.msra.mxu0 %v3408_v16  ;;  %v3819_v16 = vld [vmem:[%s4782_s28 + $0x50] sm:$0xff] }
  0x1b   :  { %3094 = vmatpush3.bf16.msra.mxu1 %v3409_v15  ;;  %2840 = vmatprep.subr.bf16.mxu0 %v3410_v17  ;;  %v3812_v15 = vld [vmem:[%s4782_s28 + $0x58] sm:$0xff]  ;;  %v3826_v17 = vld [vmem:[%s4782_s28 + $0x48] sm:$0xff] }
  0x1c   :  { %3095 = vmatprep.subr.bf16.mxu1 %v3412_v18 }
  0x1e   :  { %3398 = vset.pattern.permute.xlu0 %v3535_v0  ;;  %2841 = vmatpush3.bf16.msra.mxu0 %v3411_v19  ;;  %v3840_v19 = vld [vmem:[%s4782_s28 + $0x38] sm:$0xff] }
  0x1f   :  { %3096 = vmatpush3.bf16.msra.mxu1 %v3412_v18  ;;  %2842 = vmatprep.subr.bf16.mxu0 %v3413_v20  ;;  %v3833_v18 = vld [vmem:[%s4782_s28 + $0x40] sm:$0xff]  ;;  %v3847_v20 = vld [vmem:[%s4782_s28 + $0x30] sm:$0xff] }
  0x20   :  { %3097 = vmatprep.subr.bf16.mxu1 %v3415_v21 }
  0x22   :  { %2843 = vmatpush3.bf16.msra.mxu0 %v3414_v22  ;;  %v3861_v22 = vld [vmem:[%s4782_s28 + $0x20] sm:$0xff] }
  0x23   :  { %3098 = vmatpush3.bf16.msra.mxu1 %v3415_v21  ;;  %2844 = vmatprep.subr.bf16.mxu0 %v3416_v23  ;;  %v3854_v21 = vld [vmem:[%s4782_s28 + $0x28] sm:$0xff]  ;;  %v3867_v23 = vld [vmem:[%s4782_s28 + $0x18] sm:$0xff] }
  0x24   :  { %3099 = vmatprep.subr.bf16.mxu1 %v3418_v26 }
  0x26   :  { %2845 = vmatpush3.bf16.msra.mxu0 %v3417_v28 }
  0x27   :  { %3100 = vmatpush3.bf16.msra.mxu1 %v3418_v26  ;;  %2846 = vmatprep.subr.bf16.mxu0 %v3419_v29  ;;  %v3891_v26 = vld [vmem:[%s4782_s28] sm:$0xff] }
  0x28   :  { %3101 = vmatprep.subr.bf16.mxu1 %v3421_v30 }
  0x2a   :  { %2847 = vmatpush3.bf16.msra.mxu0 %v3420_v31 }
  0x2b   :  { %3102 = vmatpush3.bf16.msra.mxu1 %v3421_v30  ;;  %3109 = vmatprep.subr.mxu0 %v3537_v10 }
  0x2c   :  { %3103 = vmatprep.subr.bf16.mxu1 %v3422_v32 }
  0x2f   :  { %3104 = vmatpush3.bf16.msra.mxu1 %v3422_v32 }
  0x30   :  { %3144 = vmatprep.subr.mxu1 %v3537_v10 }
  0x87   :  { %v3739_v43 = vpop.permute.xlu1 %116  ;;  %v3741_v44 = vpop.permute.xlu0 %84 }
  0x88   :  { %v102_v52 = vmul.f32 %v3741_v44, %v81_v47  ;;  %v131_v54 = vmul.f32 %v3739_v43, %v113_v49 }
  0x8b   :  { %v3751_v50 = vpop.permute.xlu1 %120  ;;  %v3753_v51 = vpop.permute.xlu0 %89 }
  0x8c   :  { %v103_v53 = vmul.f32 %v3753_v51, %v80_v46  ;;  %v132_v55 = vmul.f32 %v3751_v50, %v112_v48 }
  0x8e   :  { %v135_v59 = vpack.c.bf16 %v103_v53, %v102_v52  ;;  %v137_v60 = vpack.c.bf16 %v132_v55, %v131_v54 }
  0x8f   :  { %v3763_v62 = vpop.permute.xlu1 %128 }
  0x90   :  { %v3765_v63 = vpop.permute.xlu0 %124  ;;  %366 = vmatmul.mubr.bf16.vlgmr.msra.gmra.mxu0 %v135_v59  ;;  %3105 = vmatprep.mubr.bf16.mxu1 %v137_v60  ;;  %v134_v0 = vmul.f32 %v3763_v62, %v114_v56 }
  0x91   :  { %v133_v1 = vmul.f32 %v3765_v63, %v111_v58  ;;  %373 = vmatprep.mubr.bf16.mxu0 %v139_v57  ;;  %3110 = vmatpush3.msra.mxu0 %v3783_v11 }
  0x92   :  { %3111 = vmatprep.subr.mxu0 %v3537_v10 }
  0x93   :  { %v140_v4 = vpack.c.bf16 %v134_v0, %v133_v1  ;;  %3112 = vmatpush3.msra.mxu0 %v3791_v12 }
  0x94   :  { %v3773_v5 = vpop.permute.xlu1 %94  ;;  %3113 = vmatprep.subr.mxu0 %v3537_v10 }
  0x95   :  { %v104_v6 = vmul.f32 %v3773_v5, %v79_v2  ;;  %v3776_v7 = vpop.permute.xlu0 %99  ;;  %3106 = vmatmul.mubr.bf16.vlgmr.msra.gmra.mxu1 %v140_v4  ;;  %3114 = vmatpush3.msra.mxu0 %v3798_v13 }
  0x96   :  { %v105_v8 = vmul.f32 %v3776_v7, %v78_v3  ;;  %3115 = vmatprep.subr.mxu0 %v3537_v10  ;;  %3146 = vmatprep.mubr.msk.f32.mxu1 %vm3538_vm2, %v3537_v10 }
  0x97   :  { %3116 = vmatpush3.msra.mxu0 %v3805_v14 }
  0x98   :  { %v138_v9 = vpack.c.bf16 %v105_v8, %v104_v6  ;;  %3117 = vmatprep.subr.mxu0 %v3537_v10 }
  0x99   :  { %3118 = vmatpush3.msra.mxu0 %v3812_v15 }
  0x9a   :  { %374 = vmatmul.mubr.bf16.gmra.mxu0 %v138_v9  ;;  %3119 = vmatprep.subr.mxu0 %v3537_v10 }
  0x9b   :  { %3120 = vmatpush3.msra.mxu0 %v3819_v16  ;;  %3141 = vmatprep.mubr.msk.f32.mxu0 %vm3538_vm2, %v3537_v10 }
  0x9c   :  { %3121 = vmatprep.subr.mxu0 %v3537_v10 }
  0x9d   :  { %3122 = vmatpush3.msra.mxu0 %v3826_v17 }
  0x9e   :  { %3123 = vmatprep.subr.mxu0 %v3537_v10 }
  0x9f   :  { %3124 = vmatpush3.msra.mxu0 %v3833_v18 }
  0xa0   :  { %3125 = vmatprep.subr.mxu0 %v3537_v10 }
  0xa1   :  { %3126 = vmatpush3.msra.mxu0 %v3840_v19 }
  0xa2   :  { %3127 = vmatprep.subr.mxu0 %v3537_v10 }
  0xa3   :  { %3128 = vmatpush3.msra.mxu0 %v3847_v20 }
  0xa4   :  { %3129 = vmatprep.subr.mxu0 %v3537_v10 }
  0xa5   :  { %3130 = vmatpush3.msra.mxu0 %v3854_v21 }
  0xa6   :  { %3131 = vmatprep.subr.mxu0 %v3537_v10 }
  0xa7   :  { %3132 = vmatpush3.msra.mxu0 %v3861_v22 }
  0xa8   :  { %3133 = vmatprep.subr.mxu0 %v3537_v10 }
  0xa9   :  { %3134 = vmatpush3.msra.mxu0 %v3867_v23 }
  0xaa   :  { %3135 = vmatprep.subr.mxu0 %v3537_v10 }
  0xab   :  { %3136 = vmatpush3.msra.mxu0 %v3873_v24 }
  0xac   :  { %3137 = vmatprep.subr.mxu0 %v3537_v10 }
  0xad   :  { %3138 = vmatpush3.msra.mxu0 %v3884_v25 }
  0xae   :  { %3139 = vmatprep.subr.mxu0 %v3537_v10 }
  0xaf   :  { %3140 = vmatpush3.msra.mxu0 %v3891_v26 }
 0x150   :  { %v2848_v27 = vpop.f32.mrf.mxu0 }
 0x152   :  { %v2849_v28 = vpop.f32.mrf.mxu0 }
 0x153   :  { %v2850_v33 = vadd.f32 %v2849_v28, %v2848_v27 }
 0x154   :  { %v2851_v29 = vpop.f32.mrf.mxu0 }
 0x155   :  { %v3107_v30 = vpop.f32.mrf.mxu1 }
 0x156   :  { %v2852_v31 = vpop.f32.mrf.mxu0 }
 0x157   :  { %v416_v32 = vpop.f32.mrf.mxu1  ;;  %v2853_v35 = vadd.f32 %v2852_v31, %v2851_v29 }
 0x158   :  { %v3896_v38 = vadd.f32 %v2850_v33, %v416_v32  ;;  %v3922_v32 = vld [vmem:[%s4755_s3] sm:$0xff]  ;;  %v3423_v33 = vld [vmem:[%s4756_s7 + $0x78] sm:$0xff]  }
 0x159   :  { %v3108_v34 = vpop.f32.mrf.mxu1  ;;  %3145 = vmatpush3.msra.mxu1 %v3922_v32 }
 0x15a   :  { %v2854_v37 = vpop.f32.mrf.mxu0  ;;  %v440_v47 = vmul.f32 %v3896_v38, %v3896_v38  ;;  %2889 = vmatprep.subr.bf16.mxu1 %v3423_v33 }
 0x15b   :  { %v419_v39 = vpop.f32.mrf.mxu1 }
 0x15c   :  { %v3898_v40 = vadd.f32 %v2853_v35, %v419_v39  ;;  %v2855_v41 = vpop.f32.mrf.mxu0 }
 0x15d   :  { %v2856_v42 = vadd.f32 %v2855_v41, %v2854_v37 }
 0x15e   :  { %v441_v45 = vmul.f32 %v3898_v40, %v3898_v40  ;;  %v2857_v46 = vpop.f32.mrf.mxu0  ;;  %v431_v48 = vadd.f32 %v3898_v40, %v3896_v38 }
 0x15f   :  { %v3906_v49 = vadd.f32 %v3107_v30, %v2856_v42 }
 0x160   :  { %v2858_v52 = vpop.f32.mrf.mxu0  ;;  %v444_v53 = vadd.f32 %v441_v45, %v440_v47 }
 0x161   :  { %v442_v54 = vmul.f32 %v3906_v49, %v3906_v49  ;;  %v2859_v55 = vadd.f32 %v2858_v52, %v2857_v46  ;;  %v432_v56 = vadd.f32 %v431_v48, %v3906_v49 }
 0x163   :  { %v3911_v57 = vadd.f32 %v3108_v34, %v2859_v55  ;;  %v445_v58 = vadd.f32 %v444_v53, %v442_v54  ;;  %v3425_v34 = vld [vmem:[%s4756_s7 + $0xb8] sm:$0xff]  }
 0x164   :  { %3149 = vmatprep.subr.bf16.mxu0 %v3425_v34 }
 0x165   :  { %v433_v59 = vadd.f32 %v432_v56, %v3911_v57  ;;  %v443_v60 = vmul.f32 %v3911_v57, %v3911_v57 }
 0x167   :  { %v434_v61 = vrot.slane %v433_v59, 4  ;;  %v446_v0 = vadd.f32 %v445_v58, %v443_v60 }
 0x169   :  { %v435_v1 = vadd.f32 %v434_v61, %v433_v59  ;;  %v447_v2 = vrot.slane %v446_v0, 4 }
 0x16b   :  { %v436_v3 = vrot.slane %v435_v1, 2  ;;  %v448_v4 = vadd.f32 %v447_v2, %v446_v0 }
 0x16d   :  { %v437_v6 = vadd.f32 %v436_v3, %v435_v1  ;;  %v449_v8 = vrot.slane %v448_v4, 2 }
 0x16f   :  { %v438_v9 = vrot.slane %v437_v6, 1  ;;  %v450_v27 = vadd.f32 %v449_v8, %v448_v4  ;;  %v564_v8 = vld [vmem:[%s4757_s5] sm:$0x1] }
 0x171   :  { %v451_v28 = vrot.slane %v450_v27, 1  ;;  %v439_v29 = vadd.f32 %v438_v9, %v437_v6 }
 0x173   :  { %v452_v30 = vadd.f32 %v451_v28, %v450_v27  ;;  %v568_v28 = vld [vmem:[%s4758_s6] sm:$0x1] }
 0x175   :  { %v454_v31 = vsel %vm453_vm3, %v439_v29, %v452_v30  ;;  %v3945_v30 = vsub.s32 0, %v3735_v36 }
 0x176   :  { %3142 = vmatmul.mubr.f32.vlgmr.msra.gmra.mxu0 %v454_v31 }
 0x177   :  { %3150 = vmatpush3.bf16.msra.mxu0 %v3425_v34 }
 0x236   :  { %v537_v35 = vpop.f32.mrf.mxu0 }
 0x237   :  { %v541_v37 = vsel %vm453_vm3, %v537_v35, 0.0  ;;  %v552_v39 = vsel %vm551_vm4, %v537_v35, 0.0  ;;  %v3424_v35 = vld [vmem:[%s4756_s7 + $0x38] sm:$0xff]  }
 0x238   :  { %v543_v41 = vsel %vm542_vm5, %v541_v37, 0.0  ;;  %v553_v42 = vsel %vm542_vm5, %v552_v39, 0.0  ;;  %v3143_v45 = vpop.f32.mrf.mxu0  ;;  %v3426_v39 = vld [vmem:[%s4756_s7 + $0x70] sm:$0xff]  }
 0x239   :  { %v544_v46 = vrot.slane %v543_v41, 4  ;;  %v554_v47 = vrot.slane %v553_v42, 4  ;;  %v3429_v45 = vld [vmem:[%s4756_s7 + $0x68] sm:$0xff]  }
 0x23b   :  { %v545_v48 = vadd.f32 %v544_v46, %v543_v41  ;;  %v555_v52 = vadd.f32 %v554_v47, %v553_v42  ;;  %v3427_v41 = vld [vmem:[%s4756_s7 + $0x30] sm:$0xff]   ;;  %v3430_v46 = vld [vmem:[%s4756_s7 + $0x28] sm:$0xff]  }
 0x23c   :  { %v3428_v42 = vld [vmem:[%s4756_s7 + $0xb0] sm:$0xff]   ;;  %v3431_v47 = vld [vmem:[%s4756_s7 + $0xa8] sm:$0xff]  }
 0x23d   :  { %v546_v53 = vrot.slane %v545_v48, 2  ;;  %v556_v54 = vrot.slane %v555_v52, 2  ;;  %3151 = vmatprep.subr.bf16.mxu0 %v3428_v42 }
 0x23e   :  { %3152 = vmatpush3.bf16.msra.mxu0 %v3428_v42 }
 0x23f   :  { %v547_v55 = vadd.f32 %v546_v53, %v545_v48  ;;  %v557_v56 = vadd.f32 %v556_v54, %v555_v52  ;;  %3153 = vmatprep.subr.bf16.mxu0 %v3431_v47  ;;  %v3432_v48 = vld [vmem:[%s4756_s7 + $0x60] sm:$0xff]   ;;  %v3435_v54 = vld [vmem:[%s4756_s7 + $0x58] sm:$0xff]  }
 0x240   :  { %v3433_v52 = vld [vmem:[%s4756_s7 + $0x20] sm:$0xff]  }
 0x241   :  { %v548_v58 = vrot.slane %v547_v55, 1  ;;  %v558_v59 = vrot.slane %v557_v56, 1  ;;  %v3434_v53 = vld [vmem:[%s4756_s7 + $0xa0] sm:$0xff]  }
 0x242   :  { %3154 = vmatpush3.bf16.msra.mxu0 %v3431_v47 }
 0x243   :  { %v549_v60 = vadd.f32 %v548_v58, %v547_v55  ;;  %v559_v61 = vadd.f32 %v558_v59, %v557_v56  ;;  %3155 = vmatprep.subr.bf16.mxu0 %v3434_v53  ;;  %v3436_v55 = vld [vmem:[%s4756_s7 + $0x18] sm:$0xff]   ;;  %v3438_v58 = vld [vmem:[%s4756_s7 + $0x50] sm:$0xff]  }
 0x244   :  { %v3437_v56 = vld [vmem:[%s4756_s7 + $0x98] sm:$0xff]   ;;  %v3439_v59 = vld [vmem:[%s4756_s7 + $0x10] sm:$0xff]  }
 0x245   :  { %v550_v0 = vmul.f32 0.001953125, %v549_v60  ;;  %v560_v1 = vmul.f32 0.001953125, %v559_v61  ;;  %v3440_v60 = vld [vmem:[%s4756_s7 + $0x90] sm:$0xff]   ;;  %v3441_v61 = vld [vmem:[%s4756_s7 + $0x48] sm:$0xff]  }
 0x246   :  { %3156 = vmatpush3.bf16.msra.mxu0 %v3434_v53 }
 0x247   :  { %v561_v2 = vmul.f32 %v550_v0, %v550_v0  ;;  %3157 = vmatprep.subr.bf16.mxu0 %v3437_v56 }
 0x249   :  { %v562_v3 = vsub.f32 %v560_v1, %v561_v2  ;;  %v3443_v1 = vld [vmem:[%s4756_s7 + $0x88] sm:$0xff]   ;;  %v3444_v2 = vld [vmem:[%s4756_s7 + $0x40] sm:$0xff]  }
 0x24a   :  { %3158 = vmatpush3.bf16.msra.mxu0 %v3437_v56 }
 0x24b   :  { %v563_v4 = vmax.f32 %v562_v3, 0.0  ;;  %3159 = vmatprep.subr.bf16.mxu0 %v3440_v60  ;;  %v3445_v3 = vld [vmem:[%s4756_s7] sm:$0xff]  }
 0x24d   :  { %v565_v6 = vadd.f32 1e-05, %v563_v4  ;;  %v3446_v4 = vld [vmem:[%s4756_s7 + $0x80] sm:$0xff]  }
 0x24e   :  { %3160 = vmatpush3.bf16.msra.mxu0 %v3440_v60 }
 0x24f   :  { %3503 = vrsqrt.f32 %v565_v6  ;;  %3161 = vmatprep.subr.bf16.mxu0 %v3443_v1 }
 0x252   :  { %3162 = vmatpush3.bf16.msra.mxu0 %v3443_v1 }
 0x253   :  { %3163 = vmatprep.subr.bf16.mxu0 %v3446_v4 }
 0x256   :  { %3164 = vmatpush3.bf16.msra.mxu0 %v3446_v4 }
 0x257   :  { %3204 = vmatprep.subr.mxu0 %v3537_v10 }
 0x25c   :  { %v3504_v9 = vpop.eup %3503 }
 0x25d   :  { %v567_v27 = vmul.f32 %v3504_v9, %v564_v8 }
 0x25f   :  { %v569_v29 = vmul.f32 %v567_v27, %v550_v0  ;;  %v575_v33 = vrot.slane %v567_v27, %v3945_v30  ;;  %v3442_v0 = vld [vmem:[%s4756_s7 + $0x8] sm:$0xff]  }
 0x261   :  { %v570_v31 = vsub.f32 %v568_v28, %v569_v29 }
 0x263   :  { %v581_v34 = vrot.slane %v570_v31, %v3945_v30 }
 0x265   :  { %v583_v37 = vsel %vm453_vm3, %v575_v33, %v581_v34 }
 0x266   :  { %3147 = vmatmul.mubr.msk.f32.vlgmr.msra.gmra.mxu1 %vm585_vm6, %v583_v37 }
 0x267   :  { %2890 = vmatpush3.bf16.msra.mxu1 %v3424_v35 }
 0x268   :  { %2891 = vmatprep.subr.bf16.mxu1 %v3426_v39 }
 0x26b   :  { %2892 = vmatpush3.bf16.msra.mxu1 %v3427_v41 }
 0x26c   :  { %2893 = vmatprep.subr.bf16.mxu1 %v3429_v45 }
 0x26f   :  { %2894 = vmatpush3.bf16.msra.mxu1 %v3430_v46 }
 0x270   :  { %2895 = vmatprep.subr.bf16.mxu1 %v3432_v48 }
 0x273   :  { %2896 = vmatpush3.bf16.msra.mxu1 %v3433_v52 }
 0x274   :  { %2897 = vmatprep.subr.bf16.mxu1 %v3435_v54 }
 0x277   :  { %2898 = vmatpush3.bf16.msra.mxu1 %v3436_v55 }
 0x278   :  { %2899 = vmatprep.subr.bf16.mxu1 %v3438_v58 }
 0x27b   :  { %2900 = vmatpush3.bf16.msra.mxu1 %v3439_v59 }
 0x27c   :  { %2901 = vmatprep.subr.bf16.mxu1 %v3441_v61 }
 0x27f   :  { %2902 = vmatpush3.bf16.msra.mxu1 %v3442_v0 }
 0x280   :  { %2903 = vmatprep.subr.bf16.mxu1 %v3444_v2 }
 0x283   :  { %2904 = vmatpush3.bf16.msra.mxu1 %v3445_v3 }
 0x284   :  { %3169 = vmatprep.subr.mxu1 %v3537_v10 }
 0x326   :  { %v655_v6 = vpop.f32.mrf.mxu1 }
 0x327   :  { %v659_v8 = vsel %vm453_vm3, %v655_v6, 0.0  ;;  %v672_v9 = vsel %vm551_vm4, %v655_v6, 0.0 }
 0x328   :  { %v661_v27 = vsel %vm660_vm7, %v659_v8, 0.0  ;;  %v673_v28 = vsel %vm660_vm7, %v672_v9, 0.0  ;;  %v3148_v29 = vpop.f32.mrf.mxu1 }
 0x329   :  { %v662_v31 = vrot.slane %v661_v27, 4  ;;  %v674_v33 = vrot.slane %v673_v28, 4 }
 0x32b   :  { %v663_v34 = vadd.f32 %v662_v31, %v661_v27  ;;  %v675_v35 = vadd.f32 %v674_v33, %v673_v28 }
 0x32d   :  { %v664_v37 = vrot.slane %v663_v34, 2  ;;  %v676_v39 = vrot.slane %v675_v35, 2 }
 0x32f   :  { %v665_v41 = vadd.f32 %v664_v37, %v663_v34  ;;  %v677_v42 = vadd.f32 %v676_v39, %v675_v35 }
 0x331   :  { %v666_v45 = vrot.slane %v665_v41, 1  ;;  %v678_v46 = vrot.slane %v677_v42, 1 }
 0x333   :  { %v667_v47 = vadd.f32 %v666_v45, %v665_v41  ;;  %v679_v48 = vadd.f32 %v678_v46, %v677_v42 }
 0x335   :  { %v670_v52 = vmul.f32 %v667_v47, %v3906_v49  ;;  %v671_v53 = vmul.f32 %v667_v47, %v3911_v57  ;;  %v668_v54 = vmul.f32 %v667_v47, %v3896_v38  ;;  %v669_v55 = vmul.f32 %v667_v47, %v3898_v40 }
 0x337   :  { %v682_v56 = vadd.f32 %v679_v48, %v670_v52  ;;  %v683_v58 = vadd.f32 %v679_v48, %v671_v53  ;;  %v680_v59 = vadd.f32 %v679_v48, %v668_v54  ;;  %v681_v60 = vadd.f32 %v679_v48, %v669_v55 }
 0x339   :  { %v687_v61 = vmax.f32 %v683_v58, 0.0  ;;  %v684_v0 = vmax.f32 %v680_v59, 0.0  ;;  %v685_v1 = vmax.f32 %v681_v60, 0.0  ;;  %v686_v2 = vmax.f32 %v682_v56, 0.0 }
 0x33b   :  { %v688_v3 = vrot.slane %v684_v0, 7  ;;  %v689_v4 = vrot.slane %v685_v1, 7  ;;  %v713_v6 = vpack.c.bf16 %v685_v1, %v684_v0  ;;  %v691_v8 = vrot.slane %v687_v61, 7 }
 0x33c   :  { %v700_v9 = vrot.slane %v684_v0, 1  ;;  %v701_v49 = vrot.slane %v685_v1, 1  ;;  %v702_v27 = vrot.slane %v686_v2, 1  ;;  %v703_v57 = vrot.slane %v687_v61, 1 }
 0x33d   :  { %942 = vmatprep.mubr.bf16.mxu1 %v713_v6  ;;  %v694_v38 = vsel %vm77_vm1, %v688_v3, %v689_v4  ;;  %v695_v40 = vsel %vm77_vm1, %v691_v8, %v688_v3  ;;  %v690_v28 = vrot.slane %v686_v2, 7  ;;  %v716_v48 = vpack.c.bf16 %v687_v61, %v686_v2 }
 0x33e   :  { %v696_v29 = vmul.f32 %v695_v40, %v3741_v44  ;;  %v697_v31 = vmul.f32 %v694_v38, %v3753_v51  ;;  %v705_v33 = vsel %vm110_vm0, %v701_v49, %v702_v27  ;;  %v706_v34 = vsel %vm110_vm0, %v700_v9, %v701_v49 }
 0x33f   :  { %v708_v35 = vmul.f32 %v706_v34, %v3739_v43  ;;  %v709_v37 = vmul.f32 %v705_v33, %v3751_v50  ;;  %v704_v39 = vsel %vm110_vm0, %v702_v27, %v703_v57  ;;  %v707_v41 = vsel %vm110_vm0, %v703_v57, %v700_v9 }
 0x340   :  { %v712_v42 = vpack.c.bf16 %v697_v31, %v696_v29  ;;  %v710_v45 = vmul.f32 %v704_v39, %v3765_v63  ;;  %v711_v46 = vmul.f32 %v707_v41, %v3763_v62  ;;  %v692_v52 = vsel %vm77_vm1, %v690_v28, %v691_v8 }
 0x341   :  { %v714_v47 = vpack.c.bf16 %v709_v37, %v708_v35  ;;  %v693_v53 = vsel %vm77_vm1, %v689_v4, %v690_v28  ;;  %v699_v56 = vmul.f32 %v692_v52, %v3776_v7 }
 0x342   :  { %943 = vmatmul.mubr.bf16.vlgmr.msra.gmra.mxu1 %v712_v42  ;;  %v717_v54 = vpack.c.bf16 %v711_v46, %v710_v45  ;;  %v698_v55 = vmul.f32 %v693_v53, %v3773_v5 }
 0x343   :  { %3165 = vmatprep.mubr.bf16.mxu0 %v714_v47  ;;  %950 = vmatprep.mubr.bf16.mxu1 %v716_v48 }
 0x344   :  { %3166 = vmatmul.mubr.bf16.vlgmr.msra.gmra.mxu0 %v717_v54  ;;  %3170 = vmatpush3.msra.mxu1 %v3783_v11  ;;  %v715_v58 = vpack.c.bf16 %v699_v56, %v698_v55 }
 0x345   :  { %3171 = vmatprep.subr.mxu1 %v3537_v10  ;;  %3205 = vmatpush3.msra.mxu0 %v3922_v32 }
 0x346   :  { %3172 = vmatpush3.msra.mxu1 %v3791_v12  ;;  %3206 = vmatprep.mubr.msk.f32.mxu0 %vm3538_vm2, %v3537_v10 }
 0x347   :  { %3173 = vmatprep.subr.mxu1 %v3537_v10 }
 0x348   :  { %3174 = vmatpush3.msra.mxu1 %v3798_v13 }
 0x349   :  { %3175 = vmatprep.subr.mxu1 %v3537_v10 }
 0x34a   :  { %951 = vmatmul.mubr.bf16.gmra.mxu1 %v715_v58 }
 0x34b   :  { %3176 = vmatpush3.msra.mxu1 %v3805_v14  ;;  %3201 = vmatprep.mubr.msk.f32.mxu1 %vm3538_vm2, %v3537_v10 }
 0x34c   :  { %3177 = vmatprep.subr.mxu1 %v3537_v10 }
 0x34d   :  { %3178 = vmatpush3.msra.mxu1 %v3812_v15 }
 0x34e   :  { %3179 = vmatprep.subr.mxu1 %v3537_v10 }
 0x34f   :  { %3180 = vmatpush3.msra.mxu1 %v3819_v16 }
 0x350   :  { %3181 = vmatprep.subr.mxu1 %v3537_v10 }
 0x351   :  { %3182 = vmatpush3.msra.mxu1 %v3826_v17 }
 0x352   :  { %3183 = vmatprep.subr.mxu1 %v3537_v10 }
 0x353   :  { %3184 = vmatpush3.msra.mxu1 %v3833_v18 }
 0x354   :  { %3185 = vmatprep.subr.mxu1 %v3537_v10 }
 0x355   :  { %3186 = vmatpush3.msra.mxu1 %v3840_v19 }
 0x356   :  { %3187 = vmatprep.subr.mxu1 %v3537_v10 }
 0x357   :  { %3188 = vmatpush3.msra.mxu1 %v3847_v20 }
 0x358   :  { %3189 = vmatprep.subr.mxu1 %v3537_v10 }
 0x359   :  { %3190 = vmatpush3.msra.mxu1 %v3854_v21 }
 0x35a   :  { %3191 = vmatprep.subr.mxu1 %v3537_v10 }
 0x35b   :  { %3192 = vmatpush3.msra.mxu1 %v3861_v22 }
 0x35c   :  { %3193 = vmatprep.subr.mxu1 %v3537_v10 }
 0x35d   :  { %3194 = vmatpush3.msra.mxu1 %v3867_v23 }
 0x35e   :  { %3195 = vmatprep.subr.mxu1 %v3537_v10 }
 0x35f   :  { %3196 = vmatpush3.msra.mxu1 %v3873_v24 }
 0x360   :  { %3197 = vmatprep.subr.mxu1 %v3537_v10 }
 0x361   :  { %3198 = vmatpush3.msra.mxu1 %v3884_v25 }
 0x362   :  { %3199 = vmatprep.subr.mxu1 %v3537_v10 }
 0x363   :  { %3200 = vmatpush3.msra.mxu1 %v3891_v26 }
 0x402   :  { %v2905_v11 = vpop.f32.mrf.mxu1 }
 0x404   :  { %v3167_v12 = vpop.f32.mrf.mxu0  ;;  %v2906_v13 = vpop.f32.mrf.mxu1 }
 0x405   :  { %v2907_v18 = vadd.f32 %v2906_v13, %v2905_v11 }
 0x406   :  { %v993_v14 = vpop.f32.mrf.mxu0  ;;  %v2908_v15 = vpop.f32.mrf.mxu1 }
 0x407   :  { %v4092_v24 = vadd.f32 %v2907_v18, %v993_v14 }
 0x408   :  { %v3168_v16 = vpop.f32.mrf.mxu0  ;;  %v2909_v17 = vpop.f32.mrf.mxu1 }
 0x409   :  { %v2910_v19 = vadd.f32 %v2909_v17, %v2908_v15  ;;  %v1017_v61 = vmul.f32 %v4092_v24, %v4092_v24 }
 0x40a   :  { %v996_v20 = vpop.f32.mrf.mxu0  ;;  %v2911_v21 = vpop.f32.mrf.mxu1 }
 0x40b   :  { %v4090_v22 = vadd.f32 %v2910_v19, %v996_v20 }
 0x40c   :  { %v2912_v23 = vpop.f32.mrf.mxu1 }
 0x40d   :  { %v2913_v25 = vadd.f32 %v2912_v23, %v2911_v21  ;;  %v1018_v26 = vmul.f32 %v4090_v22, %v4090_v22  ;;  %v1008_v0 = vadd.f32 %v4090_v22, %v4092_v24 }
 0x40e   :  { %v2914_v32 = vpop.f32.mrf.mxu1 }
 0x40f   :  { %v4096_v59 = vadd.f32 %v3167_v12, %v2913_v25  ;;  %v1021_v3 = vadd.f32 %v1018_v26, %v1017_v61  ;;  %v1122_v26 = vld [vmem:[%s4759_s8] sm:$0x1] }
 0x410   :  { %v2915_v60 = vpop.f32.mrf.mxu1 }
 0x411   :  { %v1019_v1 = vmul.f32 %v4096_v59, %v4096_v59  ;;  %v2916_v2 = vadd.f32 %v2915_v60, %v2914_v32  ;;  %v1009_v4 = vadd.f32 %v1008_v0, %v4096_v59  ;;  %v1126_v0 = vld [vmem:[%s4760_s9] sm:$0x1] }
 0x413   :  { %v4105_v6 = vadd.f32 %v3168_v16, %v2916_v2  ;;  %v1022_v8 = vadd.f32 %v1021_v3, %v1019_v1 }
 0x415   :  { %v1010_v9 = vadd.f32 %v1009_v4, %v4105_v6  ;;  %v1020_v49 = vmul.f32 %v4105_v6, %v4105_v6 }
 0x417   :  { %v1011_v27 = vrot.slane %v1010_v9, 4  ;;  %v1023_v38 = vadd.f32 %v1022_v8, %v1020_v49  ;;  %v3448_v49 = vld [vmem:[%s4761_s10 + $0x38] sm:$0xff]  }
 0x419   :  { %v1012_v40 = vadd.f32 %v1011_v27, %v1010_v9  ;;  %v1024_v57 = vrot.slane %v1023_v38, 4  ;;  %v3447_v9 = vld [vmem:[%s4761_s10 + $0x78] sm:$0xff]  }
 0x41a   :  { %2946 = vmatprep.subr.bf16.mxu0 %v3447_v9  ;;  %v3449_v27 = vld [vmem:[%s4761_s10 + $0xb8] sm:$0xff]  }
 0x41b   :  { %v1013_v28 = vrot.slane %v1012_v40, 2  ;;  %v1025_v29 = vadd.f32 %v1024_v57, %v1023_v38  ;;  %3209 = vmatprep.subr.bf16.mxu1 %v3449_v27  ;;  %v3450_v38 = vld [vmem:[%s4761_s10 + $0x70] sm:$0xff]  }
 0x41c   :  { %v3452_v57 = vld [vmem:[%s4761_s10 + $0xb0] sm:$0xff]  }
 0x41d   :  { %v1014_v31 = vadd.f32 %v1013_v28, %v1012_v40  ;;  %v1026_v33 = vrot.slane %v1025_v29, 2  ;;  %v3451_v40 = vld [vmem:[%s4761_s10 + $0x30] sm:$0xff]   ;;  %v3453_v28 = vld [vmem:[%s4761_s10 + $0x68] sm:$0xff]  }
 0x41f   :  { %v1015_v34 = vrot.slane %v1014_v31, 1  ;;  %v1027_v35 = vadd.f32 %v1026_v33, %v1025_v29  ;;  %v3454_v29 = vld [vmem:[%s4761_s10 + $0x28] sm:$0xff]   ;;  %v3456_v33 = vld [vmem:[%s4761_s10 + $0x60] sm:$0xff]  }
 0x421   :  { %v1028_v37 = vrot.slane %v1027_v35, 1  ;;  %v1016_v39 = vadd.f32 %v1015_v34, %v1014_v31  ;;  %v3455_v31 = vld [vmem:[%s4761_s10 + $0xa8] sm:$0xff]   ;;  %v3457_v34 = vld [vmem:[%s4761_s10 + $0x20] sm:$0xff]  }
 0x423   :  { %v1029_v41 = vadd.f32 %v1028_v37, %v1027_v35  ;;  %v3458_v35 = vld [vmem:[%s4761_s10 + $0xa0] sm:$0xff]   ;;  %v3459_v37 = vld [vmem:[%s4761_s10 + $0x58] sm:$0xff]  }
 0x425   :  { %v1030_v42 = vsel %vm453_vm3, %v1016_v39, %v1029_v41  ;;  %v3460_v39 = vld [vmem:[%s4761_s10 + $0x18] sm:$0xff]  }
 0x426   :  { %3202 = vmatmul.mubr.f32.vlgmr.msra.gmra.mxu1 %v1030_v42  ;;  %v3461_v41 = vld [vmem:[%s4761_s10 + $0x98] sm:$0xff]   ;;  %v3462_v42 = vld [vmem:[%s4761_s10 + $0x50] sm:$0xff]  }
 0x427   :  { %3210 = vmatpush3.bf16.msra.mxu1 %v3449_v27 }
 0x428   :  { %3211 = vmatprep.subr.bf16.mxu1 %v3452_v57 }
 0x42b   :  { %3212 = vmatpush3.bf16.msra.mxu1 %v3452_v57  ;;  %v3513_v57 = vld [vmem:[%s4781_s0 + $0x10] sm:$0xff] }
 0x42c   :  { %3213 = vmatprep.subr.bf16.mxu1 %v3455_v31 }
 0x42f   :  { %3214 = vmatpush3.bf16.msra.mxu1 %v3455_v31 }
 0x430   :  { %3215 = vmatprep.subr.bf16.mxu1 %v3458_v35 }
 0x433   :  { %3216 = vmatpush3.bf16.msra.mxu1 %v3458_v35 }
 0x434   :  { %3217 = vmatprep.subr.bf16.mxu1 %v3461_v41 }
 0x437   :  { %3218 = vmatpush3.bf16.msra.mxu1 %v3461_v41 }
 0x4e6   :  { %v1097_v45 = vpop.f32.mrf.mxu1 }
 0x4e7   :  { %v1101_v46 = vsel %vm453_vm3, %v1097_v45, 0.0  ;;  %v1110_v47 = vsel %vm551_vm4, %v1097_v45, 0.0  ;;  %v3463_v45 = vld [vmem:[%s4761_s10 + $0x10] sm:$0xff]  }
 0x4e8   :  { %v1102_v48 = vsel %vm542_vm5, %v1101_v46, 0.0  ;;  %v1111_v52 = vsel %vm542_vm5, %v1110_v47, 0.0  ;;  %v3203_v53 = vpop.f32.mrf.mxu1  ;;  %v3464_v46 = vld [vmem:[%s4761_s10 + $0x90] sm:$0xff]   ;;  %v3465_v47 = vld [vmem:[%s4761_s10 + $0x48] sm:$0xff]  }
 0x4e9   :  { %v1103_v54 = vrot.slane %v1102_v48, 4  ;;  %v1112_v55 = vrot.slane %v1111_v52, 4  ;;  %3219 = vmatprep.subr.bf16.mxu1 %v3464_v46  ;;  %v3468_v53 = vld [vmem:[%s4761_s10 + $0x40] sm:$0xff]  }
 0x4ea   :  { %3220 = vmatpush3.bf16.msra.mxu1 %v3464_v46 }
 0x4eb   :  { %v1104_v56 = vadd.f32 %v1103_v54, %v1102_v48  ;;  %v1113_v58 = vadd.f32 %v1112_v55, %v1111_v52  ;;  %v3467_v48 = vld [vmem:[%s4761_s10 + $0x88] sm:$0xff]   ;;  %v3470_v54 = vld [vmem:[%s4761_s10 + $0x80] sm:$0xff]  }
 0x4ec   :  { %v3466_v52 = vld [vmem:[%s4761_s10 + $0x8] sm:$0xff]   ;;  %3221 = vmatprep.subr.bf16.mxu1 %v3467_v48  ;;  %v3469_v55 = vld [vmem:[%s4761_s10] sm:$0xff]  }
 0x4ed   :  { %v1105_v11 = vrot.slane %v1104_v56, 2  ;;  %v1114_v12 = vrot.slane %v1113_v58, 2 }
 0x4ee   :  { %3222 = vmatpush3.bf16.msra.mxu1 %v3467_v48 }
 0x4ef   :  { %v1106_v13 = vadd.f32 %v1105_v11, %v1104_v56  ;;  %v1115_v14 = vadd.f32 %v1114_v12, %v1113_v58  ;;  %3223 = vmatprep.subr.bf16.mxu1 %v3470_v54 }
 0x4f1   :  { %v1107_v15 = vrot.slane %v1106_v13, 1  ;;  %v1116_v16 = vrot.slane %v1115_v14, 1 }
 0x4f2   :  { %3224 = vmatpush3.bf16.msra.mxu1 %v3470_v54 }
 0x4f3   :  { %v1108_v17 = vadd.f32 %v1107_v15, %v1106_v13  ;;  %v1117_v18 = vadd.f32 %v1116_v16, %v1115_v14  ;;  %3264 = vmatprep.subr.mxu1 %v3537_v10 }
 0x4f5   :  { %v1109_v19 = vmul.f32 0.001953125, %v1108_v17  ;;  %v1118_v20 = vmul.f32 0.001953125, %v1117_v18 }
 0x4f7   :  { %v1119_v21 = vmul.f32 %v1109_v19, %v1109_v19 }
 0x4f9   :  { %v1120_v23 = vsub.f32 %v1118_v20, %v1119_v21 }
 0x4fb   :  { %v1121_v25 = vmax.f32 %v1120_v23, 0.0 }
 0x4fd   :  { %v1123_v32 = vadd.f32 1e-05, %v1121_v25 }
 0x4ff   :  { %3505 = vrsqrt.f32 %v1123_v32 }
 0x50c   :  { %v3506_v60 = vpop.eup %3505 }
 0x50d   :  { %v1125_v61 = vmul.f32 %v3506_v60, %v1122_v26 }
 0x50f   :  { %v1127_v1 = vmul.f32 %v1125_v61, %v1109_v19  ;;  %v1133_v3 = vrot.slane %v1125_v61, %v3945_v30 }
 0x511   :  { %v1128_v2 = vsub.f32 %v1126_v0, %v1127_v1 }
 0x513   :  { %v1139_v4 = vrot.slane %v1128_v2, %v3945_v30 }
 0x515   :  { %v1141_v8 = vsel %vm453_vm3, %v1133_v3, %v1139_v4 }
 0x516   :  { %3207 = vmatmul.mubr.msk.f32.vlgmr.msra.gmra.mxu0 %vm585_vm6, %v1141_v8 }
 0x517   :  { %2947 = vmatpush3.bf16.msra.mxu0 %v3448_v49 }
 0x518   :  { %2948 = vmatprep.subr.bf16.mxu0 %v3450_v38 }
 0x51b   :  { %2949 = vmatpush3.bf16.msra.mxu0 %v3451_v40 }
 0x51c   :  { %2950 = vmatprep.subr.bf16.mxu0 %v3453_v28 }
 0x51f   :  { %2951 = vmatpush3.bf16.msra.mxu0 %v3454_v29  ;;  %v3516_v29 = vld [vmem:[%s4781_s0 + $0x8] sm:$0xff] }
 0x520   :  { %2952 = vmatprep.subr.bf16.mxu0 %v3456_v33 }
 0x523   :  { %2953 = vmatpush3.bf16.msra.mxu0 %v3457_v34 }
 0x524   :  { %2954 = vmatprep.subr.bf16.mxu0 %v3459_v37 }
 0x527   :  { %2955 = vmatpush3.bf16.msra.mxu0 %v3460_v39 }
 0x528   :  { %2956 = vmatprep.subr.bf16.mxu0 %v3462_v42 }
 0x52b   :  { %2957 = vmatpush3.bf16.msra.mxu0 %v3463_v45 }
 0x52c   :  { %2958 = vmatprep.subr.bf16.mxu0 %v3465_v47 }
 0x52f   :  { %2959 = vmatpush3.bf16.msra.mxu0 %v3466_v52 }
 0x530   :  { %2960 = vmatprep.subr.bf16.mxu0 %v3468_v53 }
 0x533   :  { %2961 = vmatpush3.bf16.msra.mxu0 %v3469_v55 }
 0x534   :  { %3229 = vmatprep.subr.mxu0 %v3537_v10 }
 0x5d6   :  { %v1211_v56 = vpop.f32.mrf.mxu0 }
 0x5d7   :  { %v1215_v58 = vsel %vm453_vm3, %v1211_v56, 0.0  ;;  %v1227_v11 = vsel %vm551_vm4, %v1211_v56, 0.0 }
 0x5d8   :  { %v1216_v12 = vsel %vm660_vm7, %v1215_v58, 0.0  ;;  %v1228_v13 = vsel %vm660_vm7, %v1227_v11, 0.0  ;;  %v3208_v14 = vpop.f32.mrf.mxu0 }
 0x5d9   :  { %v1217_v15 = vrot.slane %v1216_v12, 4  ;;  %v1229_v16 = vrot.slane %v1228_v13, 4 }
 0x5db   :  { %v1218_v17 = vadd.f32 %v1217_v15, %v1216_v12  ;;  %v1230_v18 = vadd.f32 %v1229_v16, %v1228_v13 }
 0x5dd   :  { %v1219_v19 = vrot.slane %v1218_v17, 2  ;;  %v1231_v20 = vrot.slane %v1230_v18, 2 }
 0x5df   :  { %v1220_v21 = vadd.f32 %v1219_v19, %v1218_v17  ;;  %v1232_v23 = vadd.f32 %v1231_v20, %v1230_v18 }
 0x5e1   :  { %v1221_v25 = vrot.slane %v1220_v21, 1  ;;  %v1233_v32 = vrot.slane %v1232_v23, 1 }
 0x5e3   :  { %v1222_v26 = vadd.f32 %v1221_v25, %v1220_v21  ;;  %v1234_v60 = vadd.f32 %v1233_v32, %v1232_v23 }
 0x5e5   :  { %v1223_v61 = vmul.f32 %v1222_v26, %v4092_v24  ;;  %v1224_v0 = vmul.f32 %v1222_v26, %v4090_v22  ;;  %v1225_v1 = vmul.f32 %v1222_v26, %v4096_v59  ;;  %v1226_v2 = vmul.f32 %v1222_v26, %v4105_v6  ;;  %v3514_v22 = vld [vmem:[%s4781_s0 + $0x18] sm:$0xff]  ;;  %v3515_v59 = vld [vmem:[%s4781_s0] sm:$0xff] }
 0x5e7   :  { %v1237_v3 = vadd.f32 %v1234_v60, %v1225_v1  ;;  %v1238_v4 = vadd.f32 %v1234_v60, %v1226_v2  ;;  %v1235_v8 = vadd.f32 %v1234_v60, %v1223_v61  ;;  %v1236_v9 = vadd.f32 %v1234_v60, %v1224_v0  ;;  %v4272_v61 = vld [vmem:[%s4782_s28 + $0x78] sm:$0xff]  ;;  %v4279_v0 = vld [vmem:[%s4755_s3] sm:$0xff]  ;;  %v4285_v1 = vld [vmem:[%s4782_s28 + $0x70] sm:$0xff] }
 0x5e9   :  { %v1241_v49 = vmax.f32 %v1237_v3, 0.0  ;;  %v1242_v27 = vmax.f32 %v1238_v4, 0.0  ;;  %v1239_v38 = vmax.f32 %v1235_v8, 0.0  ;;  %v1240_v40 = vmax.f32 %v1236_v9, 0.0  ;;  %v4294_v3 = vld [vmem:[%s4782_s28 + $0x68] sm:$0xff]  ;;  %v4301_v4 = vld [vmem:[%s4782_s28 + $0x60] sm:$0xff] }
 0x5ea   :  { %v4310_v8 = vld [vmem:[%s4782_s28 + $0x58] sm:$0xff]  ;;  %v4317_v9 = vld [vmem:[%s4782_s28 + $0x50] sm:$0xff] }
 0x5eb   :  { %v1245_v28 = vadd.f32 %v3513_v57, %v1241_v49  ;;  %v1246_v24 = vadd.f32 %v3514_v22, %v1242_v27  ;;  %v1243_v6 = vadd.f32 %v3515_v59, %v1239_v38  ;;  %v1244_v31 = vadd.f32 %v3516_v29, %v1240_v40  ;;  %v4324_v49 = vld [vmem:[%s4782_s28 + $0x48] sm:$0xff]  ;;  %v4331_v27 = vld [vmem:[%s4782_s28 + $0x40] sm:$0xff]  ;;  %v4338_v38 = vld [vmem:[%s4782_s28 + $0x38] sm:$0xff] }
 0x5ec   :  { %v4345_v40 = vld [vmem:[%s4782_s28 + $0x30] sm:$0xff]  ;;  %v4352_v57 = vld [vmem:[%s4782_s28 + $0x28] sm:$0xff]  ;;  %v4366_v22 = vld [vmem:[%s4782_s28 + $0x18] sm:$0xff] }
 0x5ed   :  { %v4225_v33 = vmax.f32 %v1245_v28, 0.0  ;;  %v4227_v34 = vmax.f32 %v1246_v24, 0.0  ;;  %v4229_v35 = vmax.f32 %v1243_v6, 0.0  ;;  %v4231_v37 = vmax.f32 %v1244_v31, 0.0  ;;  %v4359_v28 = vld [vmem:[%s4782_s28 + $0x20] sm:$0xff]  ;;  %v4373_v24 = vld [vmem:[%s4782_s28 + $0x10] sm:$0xff] }
 0x5ee   :  { %v4380_v59 = vld [vmem:[%s4782_s28 + $0x8] sm:$0xff]  ;;  %v4387_v6 = vld [vmem:[%s4782_s28] sm:$0xff] }
 0x5ef   :  { %v1276_v39 = vpack.c.bf16 %v4231_v37, %v4229_v35  ;;  %v1251_v41 = vrot.slane %v4229_v35, 7  ;;  %v1252_v42 = vrot.slane %v4231_v37, 7  ;;  %v1254_v45 = vrot.slane %v4227_v34, 7 }
 0x5f0   :  { %v1263_v46 = vrot.slane %v4229_v35, 1  ;;  %v1264_v47 = vrot.slane %v4231_v37, 1  ;;  %v1265_v48 = vrot.slane %v4225_v33, 1  ;;  %v1266_v54 = vrot.slane %v4227_v34, 1 }
 0x5f1   :  { %1505 = vmatprep.mubr.bf16.mxu0 %v1276_v39  ;;  %v1257_v52 = vsel %vm77_vm1, %v1251_v41, %v1252_v42  ;;  %v1258_v53 = vsel %vm77_vm1, %v1254_v45, %v1251_v41  ;;  %v1253_v55 = vrot.slane %v4225_v33, 7  ;;  %v1279_v21 = vpack.c.bf16 %v4227_v34, %v4225_v33 }
 0x5f2   :  { %v1259_v56 = vmul.f32 %v1258_v53, %v3741_v44  ;;  %v1260_v58 = vmul.f32 %v1257_v52, %v3753_v51  ;;  %v1268_v11 = vsel %vm110_vm0, %v1264_v47, %v1265_v48  ;;  %v1269_v12 = vsel %vm110_vm0, %v1263_v46, %v1264_v47 }
 0x5f3   :  { %v1271_v13 = vmul.f32 %v1269_v12, %v3739_v43  ;;  %v1272_v14 = vmul.f32 %v1268_v11, %v3751_v50  ;;  %v1267_v15 = vsel %vm110_vm0, %v1265_v48, %v1266_v54  ;;  %v1270_v16 = vsel %vm110_vm0, %v1266_v54, %v1263_v46 }
 0x5f4   :  { %v1275_v17 = vpack.c.bf16 %v1260_v58, %v1259_v56  ;;  %v1273_v18 = vmul.f32 %v1267_v15, %v3765_v63  ;;  %v1274_v19 = vmul.f32 %v1270_v16, %v3763_v62  ;;  %v1255_v23 = vsel %vm77_vm1, %v1253_v55, %v1254_v45 }
 0x5f5   :  { %v1277_v20 = vpack.c.bf16 %v1272_v14, %v1271_v13  ;;  %v1256_v25 = vsel %vm77_vm1, %v1252_v42, %v1253_v55  ;;  %v1262_v60 = vmul.f32 %v1255_v23, %v3776_v7 }
 0x5f6   :  { %1506 = vmatmul.mubr.bf16.vlgmr.msra.gmra.mxu0 %v1275_v17  ;;  %v1280_v32 = vpack.c.bf16 %v1274_v19, %v1273_v18  ;;  %v1261_v26 = vmul.f32 %v1256_v25, %v3773_v5 }
 0x5f7   :  { %3225 = vmatprep.mubr.bf16.mxu1 %v1277_v20  ;;  %1513 = vmatprep.mubr.bf16.mxu0 %v1279_v21 }
 0x5f8   :  { %3226 = vmatmul.mubr.bf16.vlgmr.msra.gmra.mxu1 %v1280_v32  ;;  %3230 = vmatpush3.msra.mxu0 %v4272_v61  ;;  %v1278_v2 = vpack.c.bf16 %v1262_v60, %v1261_v26 }
 0x5f9   :  { %3231 = vmatprep.subr.mxu0 %v3537_v10  ;;  %3265 = vmatpush3.msra.mxu1 %v4279_v0 }
 0x5fa   :  { %3232 = vmatpush3.msra.mxu0 %v4285_v1  ;;  %3266 = vmatprep.mubr.msk.f32.mxu1 %vm3538_vm2, %v3537_v10 }
 0x5fb   :  { %3233 = vmatprep.subr.mxu0 %v3537_v10 }
 0x5fc   :  { %3234 = vmatpush3.msra.mxu0 %v4294_v3 }
 0x5fd   :  { %3235 = vmatprep.subr.mxu0 %v3537_v10 }
 0x5fe   :  { %1514 = vmatmul.mubr.bf16.gmra.mxu0 %v1278_v2 }
 0x5ff   :  { %3236 = vmatpush3.msra.mxu0 %v4301_v4  ;;  %3261 = vmatprep.mubr.msk.f32.mxu0 %vm3538_vm2, %v3537_v10 }
 0x600   :  { %3237 = vmatprep.subr.mxu0 %v3537_v10 }
 0x601   :  { %3238 = vmatpush3.msra.mxu0 %v4310_v8 }
 0x602   :  { %3239 = vmatprep.subr.mxu0 %v3537_v10 }
 0x603   :  { %3240 = vmatpush3.msra.mxu0 %v4317_v9 }
 0x604   :  { %3241 = vmatprep.subr.mxu0 %v3537_v10 }
 0x605   :  { %3242 = vmatpush3.msra.mxu0 %v4324_v49 }
 0x606   :  { %3243 = vmatprep.subr.mxu0 %v3537_v10 }
 0x607   :  { %3244 = vmatpush3.msra.mxu0 %v4331_v27 }
 0x608   :  { %3245 = vmatprep.subr.mxu0 %v3537_v10 }
 0x609   :  { %3246 = vmatpush3.msra.mxu0 %v4338_v38 }
 0x60a   :  { %3247 = vmatprep.subr.mxu0 %v3537_v10 }
 0x60b   :  { %3248 = vmatpush3.msra.mxu0 %v4345_v40 }
 0x60c   :  { %3249 = vmatprep.subr.mxu0 %v3537_v10 }
 0x60d   :  { %3250 = vmatpush3.msra.mxu0 %v4352_v57 }
 0x60e   :  { %3251 = vmatprep.subr.mxu0 %v3537_v10 }
 0x60f   :  { %3252 = vmatpush3.msra.mxu0 %v4359_v28 }
 0x610   :  { %3253 = vmatprep.subr.mxu0 %v3537_v10 }
 0x611   :  { %3254 = vmatpush3.msra.mxu0 %v4366_v22 }
 0x612   :  { %3255 = vmatprep.subr.mxu0 %v3537_v10 }
 0x613   :  { %3256 = vmatpush3.msra.mxu0 %v4373_v24 }
 0x614   :  { %3257 = vmatprep.subr.mxu0 %v3537_v10 }
 0x615   :  { %3258 = vmatpush3.msra.mxu0 %v4380_v59 }
 0x616   :  { %3259 = vmatprep.subr.mxu0 %v3537_v10 }
 0x617   :  { %3260 = vmatpush3.msra.mxu0 %v4387_v6 }
 0x6b6   :  { %v2962_v29 = vpop.f32.mrf.mxu0 }
 0x6b8   :  { %v3227_v31 = vpop.f32.mrf.mxu1  ;;  %v2963_v39 = vpop.f32.mrf.mxu0 }
 0x6b9   :  { %v2964_v47 = vadd.f32 %v2963_v39, %v2962_v29 }
 0x6ba   :  { %v1556_v41 = vpop.f32.mrf.mxu1  ;;  %v2965_v42 = vpop.f32.mrf.mxu0 }
 0x6bb   :  { %v4392_v56 = vadd.f32 %v2964_v47, %v1556_v41 }
 0x6bc   :  { %v3228_v45 = vpop.f32.mrf.mxu1  ;;  %v2966_v46 = vpop.f32.mrf.mxu0 }
 0x6bd   :  { %v2967_v48 = vadd.f32 %v2966_v46, %v2965_v42  ;;  %v1580_v15 = vmul.f32 %v4392_v56, %v4392_v56 }
 0x6be   :  { %v1559_v52 = vpop.f32.mrf.mxu1  ;;  %v2968_v53 = vpop.f32.mrf.mxu0 }
 0x6bf   :  { %v4390_v54 = vadd.f32 %v2967_v48, %v1559_v52 }
 0x6c0   :  { %v2969_v55 = vpop.f32.mrf.mxu0 }
 0x6c1   :  { %v2970_v58 = vadd.f32 %v2969_v55, %v2968_v53  ;;  %v1581_v12 = vmul.f32 %v4390_v54, %v4390_v54  ;;  %v1571_v16 = vadd.f32 %v4390_v54, %v4392_v56  ;;  %v3471_v55 = vld [vmem:[%s4762_s13 + $0x78] sm:$0xff]  }
 0x6c2   :  { %v2971_v11 = vpop.f32.mrf.mxu0  ;;  %3003 = vmatprep.subr.bf16.mxu1 %v3471_v55 }
 0x6c3   :  { %v4396_v13 = vadd.f32 %v3227_v31, %v2970_v58  ;;  %v1584_v19 = vadd.f32 %v1581_v12, %v1580_v15  ;;  %v3473_v58 = vld [vmem:[%s4762_s13 + $0xb8] sm:$0xff]  }
 0x6c4   :  { %v2972_v14 = vpop.f32.mrf.mxu0  ;;  %3269 = vmatprep.subr.bf16.mxu0 %v3473_v58 }
 0x6c5   :  { %v1582_v17 = vmul.f32 %v4396_v13, %v4396_v13  ;;  %v2973_v18 = vadd.f32 %v2972_v14, %v2971_v11  ;;  %v1572_v20 = vadd.f32 %v1571_v16, %v4396_v13 }
 0x6c7   :  { %v4405_v21 = vadd.f32 %v3228_v45, %v2973_v18  ;;  %v1585_v23 = vadd.f32 %v1584_v19, %v1582_v17 }
 0x6c9   :  { %v1573_v25 = vadd.f32 %v1572_v20, %v4405_v21  ;;  %v1583_v32 = vmul.f32 %v4405_v21, %v4405_v21 }
 0x6cb   :  { %v1574_v26 = vrot.slane %v1573_v25, 4  ;;  %v1586_v60 = vadd.f32 %v1585_v23, %v1583_v32 }
 0x6cd   :  { %v1575_v2 = vadd.f32 %v1574_v26, %v1573_v25  ;;  %v1587_v29 = vrot.slane %v1586_v60, 4 }
 0x6cf   :  { %v1576_v31 = vrot.slane %v1575_v2, 2  ;;  %v1588_v39 = vadd.f32 %v1587_v29, %v1586_v60 }
 0x6d1   :  { %v1577_v41 = vadd.f32 %v1576_v31, %v1575_v2  ;;  %v1589_v42 = vrot.slane %v1588_v39, 2 }
 0x6d3   :  { %v1578_v46 = vrot.slane %v1577_v41, 1  ;;  %v1590_v47 = vadd.f32 %v1589_v42, %v1588_v39 }
 0x6d5   :  { %v1591_v48 = vrot.slane %v1590_v47, 1  ;;  %v1579_v52 = vadd.f32 %v1578_v46, %v1577_v41 }
 0x6d7   :  { %v1592_v45 = vadd.f32 %v1591_v48, %v1590_v47 }
 0x6d9   :  { %v1593_v53 = vsel %vm453_vm3, %v1579_v52, %v1592_v45  ;;  %v1685_v45 = vld [vmem:[%s4763_s11] sm:$0x1] }
 0x6da   :  { %3262 = vmatmul.mubr.f32.vlgmr.msra.gmra.mxu0 %v1593_v53 }
 0x6db   :  { %3270 = vmatpush3.bf16.msra.mxu0 %v3473_v58  ;;  %v1689_v58 = vld [vmem:[%s4764_s12] sm:$0x1] }
 0x79a   :  { %v1660_v11 = vpop.f32.mrf.mxu0 }
 0x79b   :  { %v1664_v12 = vsel %vm453_vm3, %v1660_v11, 0.0  ;;  %v1673_v14 = vsel %vm551_vm4, %v1660_v11, 0.0 }
 0x79c   :  { %v1665_v15 = vsel %vm542_vm5, %v1664_v12, 0.0  ;;  %v1674_v16 = vsel %vm542_vm5, %v1673_v14, 0.0  ;;  %v3263_v17 = vpop.f32.mrf.mxu0 }
 0x79d   :  { %v1666_v18 = vrot.slane %v1665_v15, 4  ;;  %v1675_v19 = vrot.slane %v1674_v16, 4 }
 0x79f   :  { %v1667_v20 = vadd.f32 %v1666_v18, %v1665_v15  ;;  %v1676_v23 = vadd.f32 %v1675_v19, %v1674_v16  ;;  %v3472_v16 = vld [vmem:[%s4762_s13 + $0x38] sm:$0xff]   ;;  %v3474_v18 = vld [vmem:[%s4762_s13 + $0x70] sm:$0xff]  }
 0x7a0   :  { %v3475_v19 = vld [vmem:[%s4762_s13 + $0x30] sm:$0xff]  }
 0x7a1   :  { %v1668_v25 = vrot.slane %v1667_v20, 2  ;;  %v1677_v32 = vrot.slane %v1676_v23, 2 }
 0x7a3   :  { %v1669_v26 = vadd.f32 %v1668_v25, %v1667_v20  ;;  %v1678_v60 = vadd.f32 %v1677_v32, %v1676_v23  ;;  %v3476_v20 = vld [vmem:[%s4762_s13 + $0xb0] sm:$0xff]   ;;  %v3477_v23 = vld [vmem:[%s4762_s13 + $0x68] sm:$0xff]  }
 0x7a4   :  { %3271 = vmatprep.subr.bf16.mxu0 %v3476_v20  ;;  %v3478_v25 = vld [vmem:[%s4762_s13 + $0x28] sm:$0xff]  }
 0x7a5   :  { %v1670_v2 = vrot.slane %v1669_v26, 1  ;;  %v1679_v29 = vrot.slane %v1678_v60, 1  ;;  %3272 = vmatpush3.bf16.msra.mxu0 %v3476_v20  ;;  %v3479_v32 = vld [vmem:[%s4762_s13 + $0xa8] sm:$0xff]  }
 0x7a6   :  { %3273 = vmatprep.subr.bf16.mxu0 %v3479_v32 }
 0x7a7   :  { %v1671_v31 = vadd.f32 %v1670_v2, %v1669_v26  ;;  %v1680_v39 = vadd.f32 %v1679_v29, %v1678_v60  ;;  %v3480_v26 = vld [vmem:[%s4762_s13 + $0x60] sm:$0xff]   ;;  %v3483_v29 = vld [vmem:[%s4762_s13 + $0x58] sm:$0xff]  }
 0x7a8   :  { %v3481_v60 = vld [vmem:[%s4762_s13 + $0x20] sm:$0xff]  }
 0x7a9   :  { %v1672_v41 = vmul.f32 0.001953125, %v1671_v31  ;;  %v1681_v42 = vmul.f32 0.001953125, %v1680_v39  ;;  %3274 = vmatpush3.bf16.msra.mxu0 %v3479_v32  ;;  %v3482_v2 = vld [vmem:[%s4762_s13 + $0xa0] sm:$0xff]   ;;  %v3484_v31 = vld [vmem:[%s4762_s13 + $0x18] sm:$0xff]  }
 0x7aa   :  { %3275 = vmatprep.subr.bf16.mxu0 %v3482_v2  ;;  %v3485_v39 = vld [vmem:[%s4762_s13 + $0x98] sm:$0xff]  }
 0x7ab   :  { %v1682_v46 = vmul.f32 %v1672_v41, %v1672_v41 }
 0x7ad   :  { %v1683_v47 = vsub.f32 %v1681_v42, %v1682_v46  ;;  %3276 = vmatpush3.bf16.msra.mxu0 %v3482_v2  ;;  %v3487_v42 = vld [vmem:[%s4762_s13 + $0x10] sm:$0xff]  }
 0x7ae   :  { %3277 = vmatprep.subr.bf16.mxu0 %v3485_v39  ;;  %v3488_v46 = vld [vmem:[%s4762_s13 + $0x90] sm:$0xff]  }
 0x7af   :  { %v1684_v48 = vmax.f32 %v1683_v47, 0.0  ;;  %v3489_v47 = vld [vmem:[%s4762_s13 + $0x48] sm:$0xff]  }
 0x7b1   :  { %v1686_v52 = vadd.f32 1e-05, %v1684_v48  ;;  %3278 = vmatpush3.bf16.msra.mxu0 %v3485_v39  ;;  %v3491_v48 = vld [vmem:[%s4762_s13 + $0x88] sm:$0xff]  }
 0x7b2   :  { %3279 = vmatprep.subr.bf16.mxu0 %v3488_v46 }
 0x7b3   :  { %3507 = vrsqrt.f32 %v1686_v52  ;;  %v3490_v52 = vld [vmem:[%s4762_s13 + $0x8] sm:$0xff]  }
 0x7b5   :  { %3280 = vmatpush3.bf16.msra.mxu0 %v3488_v46 }
 0x7b6   :  { %3281 = vmatprep.subr.bf16.mxu0 %v3491_v48 }
 0x7b9   :  { %3282 = vmatpush3.bf16.msra.mxu0 %v3491_v48 }
 0x7c0   :  { %v3508_v53 = vpop.eup %3507 }
 0x7c1   :  { %v1688_v55 = vmul.f32 %v3508_v53, %v1685_v45  ;;  %v3492_v45 = vld [vmem:[%s4762_s13 + $0x40] sm:$0xff]  }
 0x7c2   :  { %v3494_v53 = vld [vmem:[%s4762_s13 + $0x80] sm:$0xff]  }
 0x7c3   :  { %v1690_v11 = vmul.f32 %v1688_v55, %v1672_v41  ;;  %v1696_v14 = vrot.slane %v1688_v55, %v3945_v30  ;;  %v3486_v41 = vld [vmem:[%s4762_s13 + $0x50] sm:$0xff]   ;;  %v3493_v55 = vld [vmem:[%s4762_s13] sm:$0xff]   ;;  %3283 = vmatprep.subr.bf16.mxu0 %v3494_v53 }
 0x7c4   :  { %3284 = vmatpush3.bf16.msra.mxu0 %v3494_v53 }
 0x7c5   :  { %v1691_v12 = vsub.f32 %v1689_v58, %v1690_v11  ;;  %3324 = vmatprep.subr.mxu0 %v3537_v10 }
 0x7c7   :  { %v1702_v15 = vrot.slane %v1691_v12, %v3945_v30 }
 0x7c9   :  { %v1704_v17 = vsel %vm453_vm3, %v1696_v14, %v1702_v15 }
 0x7ca   :  { %3267 = vmatmul.mubr.msk.f32.vlgmr.msra.gmra.mxu1 %vm585_vm6, %v1704_v17 }
 0x7cb   :  { %3004 = vmatpush3.bf16.msra.mxu1 %v3472_v16 }
 0x7cc   :  { %3005 = vmatprep.subr.bf16.mxu1 %v3474_v18 }
 0x7cf   :  { %3006 = vmatpush3.bf16.msra.mxu1 %v3475_v19 }
 0x7d0   :  { %3007 = vmatprep.subr.bf16.mxu1 %v3477_v23 }
 0x7d3   :  { %3008 = vmatpush3.bf16.msra.mxu1 %v3478_v25 }
 0x7d4   :  { %3009 = vmatprep.subr.bf16.mxu1 %v3480_v26 }
 0x7d7   :  { %3010 = vmatpush3.bf16.msra.mxu1 %v3481_v60 }
 0x7d8   :  { %3011 = vmatprep.subr.bf16.mxu1 %v3483_v29 }
 0x7db   :  { %3012 = vmatpush3.bf16.msra.mxu1 %v3484_v31 }
 0x7dc   :  { %3013 = vmatprep.subr.bf16.mxu1 %v3486_v41 }
 0x7df   :  { %3014 = vmatpush3.bf16.msra.mxu1 %v3487_v42 }
 0x7e0   :  { %3015 = vmatprep.subr.bf16.mxu1 %v3489_v47 }
 0x7e3   :  { %3016 = vmatpush3.bf16.msra.mxu1 %v3490_v52 }
 0x7e4   :  { %3017 = vmatprep.subr.bf16.mxu1 %v3492_v45 }
 0x7e7   :  { %3018 = vmatpush3.bf16.msra.mxu1 %v3493_v55 }
 0x7e8   :  { %3289 = vmatprep.subr.mxu1 %v3537_v10 }
 0x88a   :  { %v1774_v58 = vpop.f32.mrf.mxu1 }
 0x88b   :  { %v1778_v11 = vsel %vm453_vm3, %v1774_v58, 0.0  ;;  %v1790_v12 = vsel %vm551_vm4, %v1774_v58, 0.0 }
 0x88c   :  { %v1779_v14 = vsel %vm660_vm7, %v1778_v11, 0.0  ;;  %v1791_v15 = vsel %vm660_vm7, %v1790_v12, 0.0  ;;  %v3268_v16 = vpop.f32.mrf.mxu1 }
 0x88d   :  { %v1780_v17 = vrot.slane %v1779_v14, 4  ;;  %v1792_v18 = vrot.slane %v1791_v15, 4 }
 0x88f   :  { %v1781_v19 = vadd.f32 %v1780_v17, %v1779_v14  ;;  %v1793_v20 = vadd.f32 %v1792_v18, %v1791_v15 }
 0x891   :  { %v1782_v23 = vrot.slane %v1781_v19, 2  ;;  %v1794_v25 = vrot.slane %v1793_v20, 2 }
 0x893   :  { %v1783_v32 = vadd.f32 %v1782_v23, %v1781_v19  ;;  %v1795_v26 = vadd.f32 %v1794_v25, %v1793_v20 }
 0x895   :  { %v1784_v60 = vrot.slane %v1783_v32, 1  ;;  %v1796_v2 = vrot.slane %v1795_v26, 1 }
 0x897   :  { %v1785_v29 = vadd.f32 %v1784_v60, %v1783_v32  ;;  %v1797_v31 = vadd.f32 %v1796_v2, %v1795_v26 }
 0x899   :  { %v1788_v39 = vmul.f32 %v1785_v29, %v4396_v13  ;;  %v1789_v41 = vmul.f32 %v1785_v29, %v4405_v21  ;;  %v1786_v42 = vmul.f32 %v1785_v29, %v4392_v56  ;;  %v1787_v46 = vmul.f32 %v1785_v29, %v4390_v54 }
 0x89b   :  { %v1800_v47 = vadd.f32 %v1797_v31, %v1788_v39  ;;  %v1801_v48 = vadd.f32 %v1797_v31, %v1789_v41  ;;  %v1798_v52 = vadd.f32 %v1797_v31, %v1786_v42  ;;  %v1799_v45 = vadd.f32 %v1797_v31, %v1787_v46 }
 0x89d   :  { %v1805_v53 = vmax.f32 %v1801_v48, 0.0  ;;  %v1802_v55 = vmax.f32 %v1798_v52, 0.0  ;;  %v1803_v58 = vmax.f32 %v1799_v45, 0.0  ;;  %v1804_v11 = vmax.f32 %v1800_v47, 0.0 }
 0x89f   :  { %v1806_v12 = vrot.slane %v1802_v55, 7  ;;  %v1807_v14 = vrot.slane %v1803_v58, 7  ;;  %v1831_v15 = vpack.c.bf16 %v1803_v58, %v1802_v55  ;;  %v1809_v16 = vrot.slane %v1805_v53, 7 }
 0x8a0   :  { %v1818_v17 = vrot.slane %v1802_v55, 1  ;;  %v1819_v13 = vrot.slane %v1803_v58, 1  ;;  %v1820_v18 = vrot.slane %v1804_v11, 1  ;;  %v1821_v21 = vrot.slane %v1805_v53, 1 }
 0x8a1   :  { %2060 = vmatprep.mubr.bf16.mxu1 %v1831_v15  ;;  %v1812_v56 = vsel %vm77_vm1, %v1806_v12, %v1807_v14  ;;  %v1813_v54 = vsel %vm77_vm1, %v1809_v16, %v1806_v12  ;;  %v1808_v19 = vrot.slane %v1804_v11, 7  ;;  %v1834_v41 = vpack.c.bf16 %v1805_v53, %v1804_v11 }
 0x8a2   :  { %v1814_v20 = vmul.f32 %v1813_v54, %v3741_v44  ;;  %v1815_v23 = vmul.f32 %v1812_v56, %v3753_v51  ;;  %v1823_v25 = vsel %vm110_vm0, %v1819_v13, %v1820_v18  ;;  %v1824_v32 = vsel %vm110_vm0, %v1818_v17, %v1819_v13 }
 0x8a3   :  { %v1826_v26 = vmul.f32 %v1824_v32, %v3739_v43  ;;  %v1827_v60 = vmul.f32 %v1823_v25, %v3751_v50  ;;  %v1822_v2 = vsel %vm110_vm0, %v1820_v18, %v1821_v21  ;;  %v1825_v29 = vsel %vm110_vm0, %v1821_v21, %v1818_v17 }
 0x8a4   :  { %v1830_v31 = vpack.c.bf16 %v1815_v23, %v1814_v20  ;;  %v1828_v44 = vmul.f32 %v1822_v2, %v3765_v63  ;;  %v1829_v51 = vmul.f32 %v1825_v29, %v3763_v62  ;;  %v1810_v42 = vsel %vm77_vm1, %v1808_v19, %v1809_v16 }
 0x8a5   :  { %v1832_v39 = vpack.c.bf16 %v1827_v60, %v1826_v26  ;;  %v1811_v43 = vsel %vm77_vm1, %v1807_v14, %v1808_v19  ;;  %v1817_v47 = vmul.f32 %v1810_v42, %v3776_v7 }
 0x8a6   :  { %2061 = vmatmul.mubr.bf16.vlgmr.msra.gmra.mxu1 %v1830_v31  ;;  %v1835_v50 = vpack.c.bf16 %v1829_v51, %v1828_v44  ;;  %v1816_v46 = vmul.f32 %v1811_v43, %v3773_v5 }
 0x8a7   :  { %3285 = vmatprep.mubr.bf16.mxu0 %v1832_v39  ;;  %2068 = vmatprep.mubr.bf16.mxu1 %v1834_v41 }
 0x8a8   :  { %3286 = vmatmul.mubr.bf16.vlgmr.msra.gmra.mxu0 %v1835_v50  ;;  %3290 = vmatpush3.msra.mxu1 %v4272_v61  ;;  %v1833_v62 = vpack.c.bf16 %v1817_v47, %v1816_v46 }
 0x8a9   :  { %3291 = vmatprep.subr.mxu1 %v3537_v10  ;;  %3325 = vmatpush3.msra.mxu0 %v4279_v0 }
 0x8aa   :  { %3292 = vmatpush3.msra.mxu1 %v4285_v1  ;;  %3326 = vmatprep.mubr.msk.f32.mxu0 %vm3538_vm2, %v3537_v10 }
 0x8ab   :  { %3293 = vmatprep.subr.mxu1 %v3537_v10 }
 0x8ac   :  { %3294 = vmatpush3.msra.mxu1 %v4294_v3 }
 0x8ad   :  { %3295 = vmatprep.subr.mxu1 %v3537_v10 }
 0x8ae   :  { %2069 = vmatmul.mubr.bf16.gmra.mxu1 %v1833_v62 }
 0x8af   :  { %3296 = vmatpush3.msra.mxu1 %v4301_v4  ;;  %3321 = vmatprep.mubr.msk.f32.mxu1 %vm3538_vm2, %v3537_v10 }
 0x8b0   :  { %3297 = vmatprep.subr.mxu1 %v3537_v10 }
 0x8b1   :  { %3298 = vmatpush3.msra.mxu1 %v4310_v8 }
 0x8b2   :  { %3299 = vmatprep.subr.mxu1 %v3537_v10 }
 0x8b3   :  { %3300 = vmatpush3.msra.mxu1 %v4317_v9 }
 0x8b4   :  { %3301 = vmatprep.subr.mxu1 %v3537_v10 }
 0x8b5   :  { %3302 = vmatpush3.msra.mxu1 %v4324_v49 }
 0x8b6   :  { %3303 = vmatprep.subr.mxu1 %v3537_v10 }
 0x8b7   :  { %3304 = vmatpush3.msra.mxu1 %v4331_v27 }
 0x8b8   :  { %3305 = vmatprep.subr.mxu1 %v3537_v10 }
 0x8b9   :  { %3306 = vmatpush3.msra.mxu1 %v4338_v38 }
 0x8ba   :  { %3307 = vmatprep.subr.mxu1 %v3537_v10 }
 0x8bb   :  { %3308 = vmatpush3.msra.mxu1 %v4345_v40 }
 0x8bc   :  { %3309 = vmatprep.subr.mxu1 %v3537_v10 }
 0x8bd   :  { %3310 = vmatpush3.msra.mxu1 %v4352_v57 }
 0x8be   :  { %3311 = vmatprep.subr.mxu1 %v3537_v10 }
 0x8bf   :  { %3312 = vmatpush3.msra.mxu1 %v4359_v28 }
 0x8c0   :  { %3313 = vmatprep.subr.mxu1 %v3537_v10 }
 0x8c1   :  { %3314 = vmatpush3.msra.mxu1 %v4366_v22 }
 0x8c2   :  { %3315 = vmatprep.subr.mxu1 %v3537_v10 }
 0x8c3   :  { %3316 = vmatpush3.msra.mxu1 %v4373_v24 }
 0x8c4   :  { %3317 = vmatprep.subr.mxu1 %v3537_v10 }
 0x8c5   :  { %3318 = vmatpush3.msra.mxu1 %v4380_v59 }
 0x8c6   :  { %3319 = vmatprep.subr.mxu1 %v3537_v10 }
 0x8c7   :  { %3320 = vmatpush3.msra.mxu1 %v4387_v6 }
 0x8c8   :  { %3349 = vmatprep.subr.mxu1 %v3537_v10 }
 0x966   :  { %v3019_v63 = vpop.f32.mrf.mxu1 }
 0x968   :  { %v3287_v5 = vpop.f32.mrf.mxu0  ;;  %v3020_v7 = vpop.f32.mrf.mxu1 }
 0x969   :  { %v3021_v53 = vadd.f32 %v3020_v7, %v3019_v63 }
 0x96a   :  { %v2111_v0 = vpop.f32.mrf.mxu0  ;;  %v3022_v48 = vpop.f32.mrf.mxu1 }
 0x96b   :  { %v4576_v15 = vadd.f32 %v3021_v53, %v2111_v0 }
 0x96c   :  { %v3288_v52 = vpop.f32.mrf.mxu0  ;;  %v3023_v45 = vpop.f32.mrf.mxu1 }
 0x96d   :  { %v3024_v55 = vadd.f32 %v3023_v45, %v3022_v48  ;;  %v2135_v54 = vmul.f32 %v4576_v15, %v4576_v15 }
 0x96e   :  { %v2114_v58 = vpop.f32.mrf.mxu0  ;;  %v3025_v11 = vpop.f32.mrf.mxu1 }
 0x96f   :  { %v4574_v12 = vadd.f32 %v3024_v55, %v2114_v58 }
 0x970   :  { %v3026_v14 = vpop.f32.mrf.mxu1 }
 0x971   :  { %v3027_v16 = vadd.f32 %v3026_v14, %v3025_v11  ;;  %v2136_v13 = vmul.f32 %v4574_v12, %v4574_v12  ;;  %v2126_v21 = vadd.f32 %v4574_v12, %v4576_v15  ;;  %v2240_v14 = vld [vmem:[%s4766_s14] sm:$0x1] }
 0x972   :  { %v3028_v17 = vpop.f32.mrf.mxu1 }
 0x973   :  { %v4580_v18 = vadd.f32 %v3287_v5, %v3027_v16  ;;  %v2139_v23 = vadd.f32 %v2136_v13, %v2135_v54  ;;  %v2244_v13 = vld [vmem:[%s4767_s15] sm:$0x1] }
 0x974   :  { %v3029_v56 = vpop.f32.mrf.mxu1 }
 0x975   :  { %v2137_v19 = vmul.f32 %v4580_v18, %v4580_v18  ;;  %v3030_v20 = vadd.f32 %v3029_v56, %v3028_v17  ;;  %v2127_v25 = vadd.f32 %v2126_v21, %v4580_v18 }
 0x977   :  { %v4589_v32 = vadd.f32 %v3288_v52, %v3030_v20  ;;  %v2140_v26 = vadd.f32 %v2139_v23, %v2137_v19  ;;  %v3496_v20 = vld [vmem:[%s4765_s16 + $0x30] sm:$0xff]  }
 0x979   :  { %v2128_v60 = vadd.f32 %v2127_v25, %v4589_v32  ;;  %v2138_v2 = vmul.f32 %v4589_v32, %v4589_v32  ;;  %v3497_v25 = vld [vmem:[%s4765_s16 + $0x28] sm:$0xff]  }
 0x97b   :  { %v2129_v29 = vrot.slane %v2128_v60, 4  ;;  %v2141_v31 = vadd.f32 %v2140_v26, %v2138_v2  ;;  %v3498_v26 = vld [vmem:[%s4765_s16 + $0x20] sm:$0xff]   ;;  %v3500_v2 = vld [vmem:[%s4765_s16 + $0x10] sm:$0xff]  }
 0x97d   :  { %v2130_v44 = vadd.f32 %v2129_v29, %v2128_v60  ;;  %v2142_v51 = vrot.slane %v2141_v31, 4  ;;  %v3499_v60 = vld [vmem:[%s4765_s16 + $0x18] sm:$0xff]   ;;  %v3501_v29 = vld [vmem:[%s4765_s16 + $0x8] sm:$0xff]  }
 0x97f   :  { %v2131_v39 = vrot.slane %v2130_v44, 2  ;;  %v2143_v41 = vadd.f32 %v2142_v51, %v2141_v31  ;;  %v3502_v31 = vld [vmem:[%s4765_s16] sm:$0xff]  }
 0x981   :  { %v2132_v42 = vadd.f32 %v2131_v39, %v2130_v44  ;;  %v2144_v43 = vrot.slane %v2143_v41, 2 }
 0x983   :  { %v2133_v50 = vrot.slane %v2132_v42, 1  ;;  %v2145_v46 = vadd.f32 %v2144_v43, %v2143_v41 }
 0x985   :  { %v2146_v47 = vrot.slane %v2145_v46, 1  ;;  %v2134_v62 = vadd.f32 %v2133_v50, %v2132_v42 }
 0x987   :  { %v2147_v63 = vadd.f32 %v2146_v47, %v2145_v46 }
 0x989   :  { %v2148_v5 = vsel %vm453_vm3, %v2134_v62, %v2147_v63 }
 0x98a   :  { %3322 = vmatmul.mubr.f32.vlgmr.msra.gmra.mxu1 %v2148_v5 }
 0x98b   :  { %3350 = vmatpush3.msra.mxu1 %v4272_v61  ;;  %3381 = vmatprep.mubr.msk.f32.mxu1 %vm3538_vm2, %v3537_v10  ;;  %v3495_v61 = vld [vmem:[%s4765_s16 + $0x38] sm:$0xff]  }
 0x98c   :  { %3351 = vmatprep.subr.mxu1 %v3537_v10  ;;  %3329 = vmatprep.subr.bf16.mxu0 %v3495_v61 }
 0x98d   :  { %3352 = vmatpush3.msra.mxu1 %v4285_v1 }
 0x98e   :  { %3353 = vmatprep.subr.mxu1 %v3537_v10 }
 0x98f   :  { %3354 = vmatpush3.msra.mxu1 %v4294_v3 }
 0x990   :  { %3355 = vmatprep.subr.mxu1 %v3537_v10 }
 0x991   :  { %3356 = vmatpush3.msra.mxu1 %v4301_v4 }
 0x992   :  { %3357 = vmatprep.subr.mxu1 %v3537_v10 }
 0x993   :  { %3358 = vmatpush3.msra.mxu1 %v4310_v8 }
 0x994   :  { %3359 = vmatprep.subr.mxu1 %v3537_v10 }
 0x995   :  { %3360 = vmatpush3.msra.mxu1 %v4317_v9 }
 0x996   :  { %3361 = vmatprep.subr.mxu1 %v3537_v10 }
 0x997   :  { %3362 = vmatpush3.msra.mxu1 %v4324_v49 }
 0x998   :  { %3363 = vmatprep.subr.mxu1 %v3537_v10 }
 0x999   :  { %3364 = vmatpush3.msra.mxu1 %v4331_v27 }
 0x99a   :  { %3365 = vmatprep.subr.mxu1 %v3537_v10 }
 0x99b   :  { %3366 = vmatpush3.msra.mxu1 %v4338_v38 }
 0x99c   :  { %3367 = vmatprep.subr.mxu1 %v3537_v10 }
 0x99d   :  { %3368 = vmatpush3.msra.mxu1 %v4345_v40 }
 0x99e   :  { %3369 = vmatprep.subr.mxu1 %v3537_v10 }
 0x99f   :  { %3370 = vmatpush3.msra.mxu1 %v4352_v57 }
 0x9a0   :  { %3371 = vmatprep.subr.mxu1 %v3537_v10 }
 0x9a1   :  { %3372 = vmatpush3.msra.mxu1 %v4359_v28 }
 0x9a2   :  { %3373 = vmatprep.subr.mxu1 %v3537_v10 }
 0x9a3   :  { %3374 = vmatpush3.msra.mxu1 %v4366_v22 }
 0x9a4   :  { %3375 = vmatprep.subr.mxu1 %v3537_v10 }
 0x9a5   :  { %3376 = vmatpush3.msra.mxu1 %v4373_v24 }
 0x9a6   :  { %3377 = vmatprep.subr.mxu1 %v3537_v10 }
 0x9a7   :  { %3378 = vmatpush3.msra.mxu1 %v4380_v59 }
 0x9a8   :  { %3379 = vmatprep.subr.mxu1 %v3537_v10 }
 0x9a9   :  { %3380 = vmatpush3.msra.mxu1 %v4387_v6 }
 0x9aa   :  { %3384 = vmatprep.subr.mxu1 %v3537_v10 }
 0xa4a   :  { %v2215_v1 = vpop.f32.mrf.mxu1 }
 0xa4b   :  { %v2219_v3 = vsel %vm453_vm3, %v2215_v1, 0.0  ;;  %v2228_v4 = vsel %vm551_vm4, %v2215_v1, 0.0 }
 0xa4c   :  { %v2220_v8 = vsel %vm542_vm5, %v2219_v3, 0.0  ;;  %v2229_v9 = vsel %vm542_vm5, %v2228_v4, 0.0  ;;  %v3323_v49 = vpop.f32.mrf.mxu1 }
 0xa4d   :  { %v2221_v27 = vrot.slane %v2220_v8, 4  ;;  %v2230_v38 = vrot.slane %v2229_v9, 4 }
 0xa4f   :  { %v2222_v40 = vadd.f32 %v2221_v27, %v2220_v8  ;;  %v2231_v57 = vadd.f32 %v2230_v38, %v2229_v9 }
 0xa51   :  { %v2223_v28 = vrot.slane %v2222_v40, 2  ;;  %v2232_v22 = vrot.slane %v2231_v57, 2 }
 0xa53   :  { %v2224_v24 = vadd.f32 %v2223_v28, %v2222_v40  ;;  %v2233_v59 = vadd.f32 %v2232_v22, %v2231_v57 }
 0xa55   :  { %v2225_v6 = vrot.slane %v2224_v24, 1  ;;  %v2234_v7 = vrot.slane %v2233_v59, 1 }
 0xa57   :  { %v2226_v0 = vadd.f32 %v2225_v6, %v2224_v24  ;;  %v2235_v48 = vadd.f32 %v2234_v7, %v2233_v59 }
 0xa59   :  { %v2227_v52 = vmul.f32 0.001953125, %v2226_v0  ;;  %v2236_v45 = vmul.f32 0.001953125, %v2235_v48 }
 0xa5b   :  { %v2237_v53 = vmul.f32 %v2227_v52, %v2227_v52 }
 0xa5d   :  { %v2238_v55 = vsub.f32 %v2236_v45, %v2237_v53 }
 0xa5f   :  { %v2239_v58 = vmax.f32 %v2238_v55, 0.0 }
 0xa61   :  { %v2241_v11 = vadd.f32 1e-05, %v2239_v58 }
 0xa63   :  { %3509 = vrsqrt.f32 %v2241_v11 }
 0xa70   :  { %v3510_v16 = vpop.eup %3509 }
 0xa71   :  { %v2243_v17 = vmul.f32 %v3510_v16, %v2240_v14 }
 0xa73   :  { %v2245_v56 = vmul.f32 %v2243_v17, %v2227_v52  ;;  %v2251_v21 = vrot.slane %v2243_v17, %v3945_v30 }
 0xa75   :  { %v2246_v54 = vsub.f32 %v2244_v13, %v2245_v56 }
 0xa77   :  { %v2257_v19 = vrot.slane %v2246_v54, %v3945_v30 }
 0xa79   :  { %v2259_v23 = vsel %vm453_vm3, %v2251_v21, %v2257_v19 }
 0xa7a   :  { %3327 = vmatmul.mubr.msk.f32.vlgmr.msra.gmra.mxu0 %vm585_vm6, %v2259_v23 }
 0xa7b   :  { %3330 = vmatpush3.bf16.msra.mxu0 %v3495_v61 }
 0xa7c   :  { %3331 = vmatprep.subr.bf16.mxu0 %v3496_v20 }
 0xa7f   :  { %3332 = vmatpush3.bf16.msra.mxu0 %v3496_v20 }
 0xa80   :  { %3333 = vmatprep.subr.bf16.mxu0 %v3497_v25 }
 0xa83   :  { %3334 = vmatpush3.bf16.msra.mxu0 %v3497_v25 }
 0xa84   :  { %3335 = vmatprep.subr.bf16.mxu0 %v3498_v26 }
 0xa87   :  { %3336 = vmatpush3.bf16.msra.mxu0 %v3498_v26 }
 0xa88   :  { %3337 = vmatprep.subr.bf16.mxu0 %v3499_v60 }
 0xa8b   :  { %3338 = vmatpush3.bf16.msra.mxu0 %v3499_v60 }
 0xa8c   :  { %3339 = vmatprep.subr.bf16.mxu0 %v3500_v2 }
 0xa8f   :  { %3340 = vmatpush3.bf16.msra.mxu0 %v3500_v2 }
 0xa90   :  { %3341 = vmatprep.subr.bf16.mxu0 %v3501_v29 }
 0xa93   :  { %3342 = vmatpush3.bf16.msra.mxu0 %v3501_v29 }
 0xa94   :  { %3343 = vmatprep.subr.bf16.mxu0 %v3502_v31 }
 0xa97   :  { %3344 = vmatpush3.bf16.msra.mxu0 %v3502_v31 }
 0xb3a   :  { %v2329_v44 = vpop.f32.mrf.mxu0 }
 0xb3b   :  { %v2333_v51 = vsel %vm453_vm3, %v2329_v44, 0.0  ;;  %v2345_v39 = vsel %vm551_vm4, %v2329_v44, 0.0 }
 0xb3c   :  { %v2334_v41 = vsel %vm660_vm7, %v2333_v51, 0.0  ;;  %v2346_v42 = vsel %vm660_vm7, %v2345_v39, 0.0  ;;  %v3328_v43 = vpop.f32.mrf.mxu0  ;;  %v3534_v39 = vld [vmem:[%s4755_s3] sm:$0xff] }
 0xb3d   :  { %v2335_v50 = vrot.slane %v2334_v41, 4  ;;  %v2347_v46 = vrot.slane %v2346_v42, 4 }
 0xb3f   :  { %v2336_v47 = vadd.f32 %v2335_v50, %v2334_v41  ;;  %v2348_v62 = vadd.f32 %v2347_v46, %v2346_v42 }
 0xb41   :  { %v2337_v63 = vrot.slane %v2336_v47, 2  ;;  %v2349_v5 = vrot.slane %v2348_v62, 2 }
 0xb43   :  { %v2338_v61 = vadd.f32 %v2337_v63, %v2336_v47  ;;  %v2350_v1 = vadd.f32 %v2349_v5, %v2348_v62 }
 0xb45   :  { %v2339_v3 = vrot.slane %v2338_v61, 1  ;;  %v2351_v4 = vrot.slane %v2350_v1, 1 }
 0xb47   :  { %v2340_v8 = vadd.f32 %v2339_v3, %v2338_v61  ;;  %v2352_v9 = vadd.f32 %v2351_v4, %v2350_v1 }
 0xb49   :  { %v2341_v49 = vmul.f32 %v2340_v8, %v4576_v15  ;;  %v2342_v27 = vmul.f32 %v2340_v8, %v4574_v12  ;;  %v2343_v38 = vmul.f32 %v2340_v8, %v4580_v18  ;;  %v2344_v40 = vmul.f32 %v2340_v8, %v4589_v32 }
 0xb4b   :  { %v2353_v57 = vadd.f32 %v2352_v9, %v2341_v49  ;;  %v2354_v28 = vadd.f32 %v2352_v9, %v2342_v27  ;;  %v2355_v22 = vadd.f32 %v2352_v9, %v2343_v38  ;;  %v2356_v24 = vadd.f32 %v2352_v9, %v2344_v40 }
 0xb4d   :  { %v2357_v59 = vmax.f32 %v2353_v57, 0.0  ;;  %v2358_v6 = vmax.f32 %v2354_v28, 0.0  ;;  %v2359_v7 = vmax.f32 %v2355_v22, 0.0  ;;  %v2360_v0 = vmax.f32 %v2356_v24, 0.0 }
 0xb4f   :  { %v2361_v48 = vadd.f32 %v2357_v59, %v4229_v35  ;;  %v2362_v52 = vadd.f32 %v2358_v6, %v4231_v37  ;;  %v2363_v15 = vadd.f32 %v2359_v7, %v4225_v33  ;;  %v2364_v12 = vadd.f32 %v2360_v0, %v4227_v34  ;;  %v2594_v59 = vld [vmem:[%s4768_s17] sm:$0x1] }
 0xb50   :  { %v2598_v0 = vld [vmem:[%s4769_s18] sm:$0x1] }
 0xb51   :  { %v2365_v45 = vpack.c.bf16 %v2362_v52, %v2361_v48  ;;  %v2366_v18 = vpack.c.bf16 %v2364_v12, %v2363_v15 }
 0xb53   :  { %3345 = vmatprep.mubr.bf16.mxu0 %v2365_v45 }
 0xb54   :  { %3346 = vmatmul.mubr.bf16.vlgmr.msra.gmra.mxu0 %v2366_v18 }
 0xc14   :  { %v4685_v32 = vpop.f32.mrf.mxu0 }
 0xc15   :  { %v2491_v37 = vmul.f32 %v4685_v32, %v4685_v32 }
 0xc16   :  { %v4687_v53 = vpop.f32.mrf.mxu0 }
 0xc17   :  { %v2489_v35 = vmul.f32 %v4687_v53, %v4687_v53 }
 0xc18   :  { %v4689_v55 = vpop.f32.mrf.mxu0 }
 0xc19   :  { %v2492_v16 = vmul.f32 %v4689_v55, %v4689_v55 }
 0xc1a   :  { %v4691_v58 = vpop.f32.mrf.mxu0 }
 0xc1b   :  { %v2480_v33 = vadd.f32 %v4691_v58, %v4687_v53  ;;  %v2490_v34 = vmul.f32 %v4691_v58, %v4691_v58 }
 0xc1d   :  { %v2481_v11 = vadd.f32 %v4685_v32, %v2480_v33  ;;  %v2493_v14 = vadd.f32 %v2490_v34, %v2489_v35 }
 0xc1f   :  { %v2482_v17 = vadd.f32 %v4689_v55, %v2481_v11  ;;  %v2494_v13 = vadd.f32 %v2493_v14, %v2491_v37 }
 0xc21   :  { %v2483_v56 = vrot.slane %v2482_v17, 4  ;;  %v2495_v54 = vadd.f32 %v2494_v13, %v2492_v16 }
 0xc23   :  { %v2484_v21 = vadd.f32 %v2483_v56, %v2482_v17  ;;  %v2496_v19 = vrot.slane %v2495_v54, 4 }
 0xc25   :  { %v2485_v20 = vrot.slane %v2484_v21, 2  ;;  %v2497_v23 = vadd.f32 %v2496_v19, %v2495_v54 }
 0xc27   :  { %v2486_v25 = vadd.f32 %v2485_v20, %v2484_v21  ;;  %v2498_v26 = vrot.slane %v2497_v23, 2 }
 0xc29   :  { %v2487_v60 = vrot.slane %v2486_v25, 1  ;;  %v2499_v2 = vadd.f32 %v2498_v26, %v2497_v23 }
 0xc2b   :  { %v2500_v29 = vrot.slane %v2499_v2, 1  ;;  %v2488_v31 = vadd.f32 %v2487_v60, %v2486_v25 }
 0xc2d   :  { %v2501_v44 = vadd.f32 %v2500_v29, %v2499_v2 }
 0xc2f   :  { %v2502_v51 = vsel %vm453_vm3, %v2488_v31, %v2501_v44 }
 0xc30   :  { %3382 = vmatmul.mubr.f32.vlgmr.msra.gmra.mxu1 %v2502_v51 }
 0xc31   :  { %3385 = vmatpush3.msra.mxu1 %v3534_v39  ;;  %3386 = vmatprep.mubr.msk.f32.mxu1 %vm3538_vm2, %v3537_v10 }
 0xcf0   :  { %v2569_v41 = vpop.f32.mrf.mxu1 }
 0xcf1   :  { %v2573_v42 = vsel %vm453_vm3, %v2569_v41, 0.0  ;;  %v2582_v43 = vsel %vm551_vm4, %v2569_v41, 0.0 }
 0xcf2   :  { %v2574_v50 = vsel %vm542_vm5, %v2573_v42, 0.0  ;;  %v2583_v46 = vsel %vm542_vm5, %v2582_v43, 0.0  ;;  %v3383_v47 = vpop.f32.mrf.mxu1 }
 0xcf3   :  { %v2575_v62 = vrot.slane %v2574_v50, 4  ;;  %v2584_v63 = vrot.slane %v2583_v46, 4 }
 0xcf5   :  { %v2576_v5 = vadd.f32 %v2575_v62, %v2574_v50  ;;  %v2585_v61 = vadd.f32 %v2584_v63, %v2583_v46 }
 0xcf7   :  { %v2577_v1 = vrot.slane %v2576_v5, 2  ;;  %v2586_v3 = vrot.slane %v2585_v61, 2 }
 0xcf9   :  { %v2578_v4 = vadd.f32 %v2577_v1, %v2576_v5  ;;  %v2587_v10 = vadd.f32 %v2586_v3, %v2585_v61 }
 0xcfb   :  { %v2579_v8 = vrot.slane %v2578_v4, 1  ;;  %v2588_v9 = vrot.slane %v2587_v10, 1 }
 0xcfd   :  { %v2580_v49 = vadd.f32 %v2579_v8, %v2578_v4  ;;  %v2589_v27 = vadd.f32 %v2588_v9, %v2587_v10 }
 0xcff   :  { %v2581_v38 = vmul.f32 0.001953125, %v2580_v49  ;;  %v2590_v40 = vmul.f32 0.001953125, %v2589_v27 }
 0xd01   :  { %v2591_v57 = vmul.f32 %v2581_v38, %v2581_v38 }
 0xd03   :  { %v2592_v28 = vsub.f32 %v2590_v40, %v2591_v57 }
 0xd05   :  { %v2593_v22 = vmax.f32 %v2592_v28, 0.0 }
 0xd07   :  { %v2595_v24 = vadd.f32 1e-05, %v2593_v22 }
 0xd09   :  { %3511 = vrsqrt.f32 %v2595_v24 }
 0xd16   :  { %v3512_v6 = vpop.eup %3511 }
 0xd17   :  { %v2597_v7 = vmul.f32 %v3512_v6, %v2594_v59 }
 0xd19   :  { %v2599_v48 = vmul.f32 %v2597_v7, %v2581_v38  ;;  %v2605_v15 = vrot.slane %v2597_v7, %v3945_v30 }
 0xd1b   :  { %v2600_v52 = vsub.f32 %v2598_v0, %v2599_v48 }
 0xd1d   :  { %v2611_v12 = vrot.slane %v2600_v52, %v3945_v30 }
 0xd1f   :  { %v2613_v45 = vsel %vm453_vm3, %v2605_v15, %v2611_v12 }
 0xd20   :  { %3387 = vmatmul.mubr.msk.f32.vlgmr.msra.gmra.mxu1 %vm585_vm6, %v2613_v45 }
 0xde0   :  { %v2683_v18 = vpop.f32.mrf.mxu1 }
 0xde1   :  { %v2687_v35 = vsel %vm453_vm3, %v2683_v18, 0.0  ;;  %v2699_v33 = vsel %vm551_vm4, %v2683_v18, 0.0 }
 0xde2   :  { %v2688_v34 = vsel %vm660_vm7, %v2687_v35, 0.0  ;;  %v2700_v37 = vsel %vm660_vm7, %v2699_v33, 0.0  ;;  %v3388_v11 = vpop.f32.mrf.mxu1 }
 0xde3   :  { %v2689_v14 = vrot.slane %v2688_v34, 4  ;;  %v2701_v16 = vrot.slane %v2700_v37, 4 }
 0xde5   :  { %v2690_v30 = vadd.f32 %v2689_v14, %v2688_v34  ;;  %v2702_v17 = vadd.f32 %v2701_v16, %v2700_v37 }
 0xde7   :  { %v2691_v13 = vrot.slane %v2690_v30, 2  ;;  %v2703_v56 = vrot.slane %v2702_v17, 2 }
 0xde9   :  { %v2692_v54 = vadd.f32 %v2691_v13, %v2690_v30  ;;  %v2704_v21 = vadd.f32 %v2703_v56, %v2702_v17 }
 0xdeb   :  { %v2693_v19 = vrot.slane %v2692_v54, 1  ;;  %v2705_v20 = vrot.slane %v2704_v21, 1 }
 0xded   :  { %v2694_v23 = vadd.f32 %v2693_v19, %v2692_v54  ;;  %v2706_v25 = vadd.f32 %v2705_v20, %v2704_v21 }
 0xdef   :  { %v2695_v36 = vmul.f32 %v2694_v23, %v4687_v53  ;;  %v2696_v26 = vmul.f32 %v2694_v23, %v4691_v58  ;;  %v2697_v60 = vmul.f32 %v4685_v32, %v2694_v23  ;;  %v2698_v2 = vmul.f32 %v4689_v55, %v2694_v23 }
 0xdf1   :  { %v2707_v29 = vadd.f32 %v2706_v25, %v2695_v36  ;;  %v2708_v31 = vadd.f32 %v2706_v25, %v2696_v26  ;;  %v2709_v44 = vadd.f32 %v2706_v25, %v2697_v60  ;;  %v2710_v51 = vadd.f32 %v2706_v25, %v2698_v2 }
 0xdf3   :  { %v2711_v39 = vmax.f32 %v2707_v29, 0.0  ;;  %v2712_v41 = vmax.f32 %v2708_v31, 0.0  ;;  %v2713_v42 = vmax.f32 %v2709_v44, 0.0  ;;  %v2714_v43 = vmax.f32 %v2710_v51, 0.0 }
 0xdf5   :  { %2715 = vst [vmem:[%s4770_s19] sm:$0xff] %v2711_v39  ;;  %2716 = vst [vmem:[%s4770_s19 + $0x8] sm:$0xff] %v2712_v41 }
 0xdf6   :  { %2717 = vst [vmem:[%s4770_s19 + $0x10] sm:$0xff] %v2713_v42  ;;  %2718 = vst [vmem:[%s4770_s19 + $0x18] sm:$0xff] %v2714_v43 }

</bundles_post_ra>
